<compile_context>
chip_gen: v7x
topology: tpu7x:2x2x1
jax: 0.10.0
libtpu: 0.0.40
codegen_flags: <defaults>
</compile_context>

<pallas_src>
import math
from functools import partial

import numpy as np
import jax
import jax.numpy as jnp
from jax.experimental import pallas as pl
from jax.experimental.pallas import tpu as pltpu  # noqa: F401  (TPU backend)


# -----------------------------------------------------------------------------
# Static slab layout (shared by the host-side packer and the kernel)
# -----------------------------------------------------------------------------
def _round8(n):
    return (n + 7) // 8 * 8


def _gcn_layout(B, N, Fin, H, num_stage):
    BN = B * N
    n_gc = 2 + 2 * num_stage                       # gc1, (gc1,gc2)*stage, gc7
    fins = [Fin] + [H] * (2 * num_stage) + [H]
    fouts = [H] * (1 + 2 * num_stage) + [Fin]
    MW = 128 * ((max(BN, H, Fin) + 127) // 128)    # lane-dense "mat" width
    VW = max(H, Fin)                               # "vec" width

    gc_w, gc_att = [], []
    off = 0
    for i in range(n_gc):
        gc_w.append(off)
        off += _round8(fins[i])
        gc_att.append(off)
        off += _round8(BN)
    mat_rows = off

    gc_b, bn = [], []
    off = 0
    for i in range(n_gc):
        gc_b.append(off)
        off += 8                                   # bias block padded to 8 rows
        if i < n_gc - 1:                           # every gc except gc7 has a BN
            bn.append(off)
            off += 2 * _round8(N)
    vec_rows = off

    return dict(B=B, N=N, Fin=Fin, H=H, BN=BN, n_gc=n_gc,
                fins=fins, fouts=fouts, MW=MW, VW=VW,
                gc_w=gc_w, gc_att=gc_att, gc_b=gc_b, bn=bn,
                mat_rows=mat_rows, vec_rows=vec_rows)


def _pad_block(a, rows, cols):
    r, c = a.shape
    return jnp.pad(a.astype(jnp.float32), ((0, rows - r), (0, cols - c)))


def _pack_params(params, L):
    """Host-side (plain XLA, outside the kernel): pack every parameter into two
    contiguous f32 slabs so the Pallas kernel sees 3 DMAs total (x, mat, vec)."""
    B, N, H = L["B"], L["N"], L["H"]
    MW, VW, BN = L["MW"], L["VW"], L["BN"]
    eye_b = jnp.eye(B, dtype=jnp.float32)

    mat_parts, vec_parts = [], []

    def add_gc(gc):
        w = gc["w"]
        att_bd = jnp.kron(eye_b, gc["att"].astype(jnp.float32))   # (B*N, B*N)
        mat_parts.append(_pad_block(w, _round8(w.shape[0]), MW))
        mat_parts.append(_pad_block(att_bd, _round8(BN), MW))
        vec_parts.append(_pad_block(gc["b"].reshape(1, -1), 8, VW))

    def add_bn(bn):
        vec_parts.append(_pad_block(bn["gamma"].reshape(N, H), _round8(N), VW))
        vec_parts.append(_pad_block(bn["beta"].reshape(N, H), _round8(N), VW))

    add_gc(params["gc1"])
    add_bn(params["bn1"])
    for blk in params["gcbs"]:
        add_gc(blk["gc1"])
        add_bn(blk["bn1"])
        add_gc(blk["gc2"])
        add_bn(blk["bn2"])
    add_gc(params["gc7"])

    mat = jnp.concatenate(mat_parts, axis=0)
    vec = jnp.concatenate(vec_parts, axis=0)
    assert mat.shape == (L["mat_rows"], MW)
    assert vec.shape == (L["vec_rows"], VW)
    return mat, vec


# -----------------------------------------------------------------------------
# Fused whole-network Pallas kernel
# -----------------------------------------------------------------------------
def _make_gcn_kernel(L, num_stage):
    B, N, H = L["B"], L["N"], L["H"]
    BN = L["BN"]
    n_gc = L["n_gc"]
    fins, fouts = L["fins"], L["fouts"]
    gc_w, gc_att, gc_b, bn = L["gc_w"], L["gc_att"], L["gc_b"], L["bn"]
    n8 = _round8(N)
    inv_b = 1.0 / B

    def kernel(x_ref, mat_ref, vec_ref, o_ref):

        def gconv(y, i):
            # out = att_bd @ (y @ W) + b, all on the flat (B*N, F) slab
            fi, fo = fins[i], fouts[i]
            w = mat_ref[gc_w[i]:gc_w[i] + fi, 0:fo]            # (fi, fo)
            att = mat_ref[gc_att[i]:gc_att[i] + BN, 0:BN]      # block-diag (BN, BN)
            b = vec_ref[gc_b[i]:gc_b[i] + 1, 0:fo]             # (1, fo)
            support = jnp.dot(y, w, preferred_element_type=jnp.float32)
            out = jnp.dot(att, support, preferred_element_type=jnp.float32)
            return out + b

        def bn_tanh(y, j):
            # Training-mode BatchNorm1d (batch stats, biased var, eps=1e-5) + tanh
            g = vec_ref[bn[j]:bn[j] + N, 0:H]                  # (N, H)
            be = vec_ref[bn[j] + n8:bn[j] + n8 + N, 0:H]       # (N, H)
            acc = y[0:N, :]
            for bb in range(1, B):
                acc = acc + y[bb * N:(bb + 1) * N, :]
            mean = acc * inv_b
            d = y[0:N, :] - mean
            vacc = d * d
            for bb in range(1, B):
                d = y[bb * N:(bb + 1) * N, :] - mean
                vacc = vacc + d * d
            var = vacc * inv_b
            s = g * jax.lax.rsqrt(var + 1e-5)
            t = be - mean * s
            parts = [jnp.tanh(y[bb * N:(bb + 1) * N, :] * s + t)
                     for bb in range(B)]
            return parts[0] if B == 1 else jnp.concatenate(parts, axis=0)

        x = x_ref[...]                                         # (B*N, Fin) f32

        # --- gc1 -> bn1 -> tanh (dropout = identity) ---
        y = bn_tanh(gconv(x, 0), 0)

        # --- residual GC blocks ---
        # TODO(synk): for large num_stage, stack per-stage params along a
        # leading stage axis and use lax.fori_loop to keep vreg pressure flat.
        gi, bi = 1, 1
        for _ in range(num_stage):
            z = bn_tanh(gconv(y, gi), bi)
            z = bn_tanh(gconv(z, gi + 1), bi + 1)
            y = y + z
            gi += 2
            bi += 2

        # --- gc7 + global residual ---
        y = gconv(y, n_gc - 1) + x
        o_ref[...] = y.astype(o_ref.dtype)

    return kernel


def _full_spec(shape):
    nd = len(shape)
    return pl.BlockSpec(shape, lambda *_: (0,) * nd)


@partial(jax.jit, static_argnames=("num_stage",))
def gcn_forward(params, x, num_stage):
    B, N, Fin = x.shape
    H = params["gc1"]["w"].shape[1]
    L = _gcn_layout(B, N, Fin, H, num_stage)
    mat, vec = _pack_params(params, L)
    x2 = x.reshape(B * N, Fin).astype(jnp.float32)   # free bitcast, outside kernel
    kernel = _make_gcn_kernel(L, num_stage)
    out2 = pl.pallas_call(
        kernel,
        out_shape=jax.ShapeDtypeStruct((B * N, Fin), jnp.float32),
        in_specs=[_full_spec(x2.shape), _full_spec(mat.shape), _full_spec(vec.shape)],
        out_specs=_full_spec((B * N, Fin)),
    )(x2, mat, vec)
    return out2.reshape(B, N, Fin)


# -----------------------------------------------------------------------------
# Parameter construction (mirrors PyTorch init shapes/ranges)
# -----------------------------------------------------------------------------
def init_graph_conv_params(key, in_features, out_features, node_n):
    stdv = 1.0 / math.sqrt(out_features)
    k1, k2, k3 = jax.random.split(key, 3)
    w = jax.random.uniform(k1, (in_features, out_features), jnp.float32,
                           minval=-stdv, maxval=stdv)
    att = jax.random.uniform(k2, (node_n, node_n), jnp.float32,
                             minval=-stdv, maxval=stdv)
    bias = jax.random.uniform(k3, (out_features,), jnp.float32,
                              minval=-stdv, maxval=stdv)
    return {"w": w, "att": att, "b": bias}


def init_bn_params(node_n, features):
    # PyTorch BatchNorm1d default affine init: weight=1, bias=0
    return {"gamma": jnp.ones((node_n * features,), jnp.float32),
            "beta": jnp.zeros((node_n * features,), jnp.float32)}


def init_gcn_params(key, input_feature, hidden_feature, num_stage, node_n):
    keys = jax.random.split(key, 2 + 2 * num_stage)
    params = {
        "gc1": init_graph_conv_params(keys[0], input_feature, hidden_feature, node_n),
        "bn1": init_bn_params(node_n, hidden_feature),
        "gcbs": [],
        "gc7": init_graph_conv_params(keys[1], hidden_feature, input_feature, node_n),
    }
    for i in range(num_stage):
        blk = {
            "gc1": init_graph_conv_params(keys[2 + 2 * i], hidden_feature,
                                          hidden_feature, node_n),
            "bn1": init_bn_params(node_n, hidden_feature),
            "gc2": init_graph_conv_params(keys[3 + 2 * i], hidden_feature,
                                          hidden_feature, node_n),
            "bn2": init_bn_params(node_n, hidden_feature),
        }
        params["gcbs"].append(blk)
    return params


# -----------------------------------------------------------------------------
# Pure-JAX reference (numerical sanity check for the fused kernel)
# -----------------------------------------------------------------------------
def _ref_gconv(x, gc):
    support = jnp.matmul(x, gc["w"], precision=jax.lax.Precision.HIGHEST)
    out = jnp.matmul(gc["att"], support, precision=jax.lax.Precision.HIGHEST)
    return out + gc["b"]


def _ref_bn_tanh(y, bn, node_n, feat):
    g = bn["gamma"].reshape(1, node_n, feat)
    b = bn["beta"].reshape(1, node_n, feat)
    mean = jnp.mean(y, axis=0, keepdims=True)
    var = jnp.mean((y - mean) ** 2, axis=0, keepdims=True)
    return jnp.tanh((y - mean) * jax.lax.rsqrt(var + 1e-5) * g + b)


def gcn_forward_ref(params, x, num_stage):
    N = params["gc1"]["att"].shape[0]
    H = params["gc1"]["w"].shape[1]
    y = _ref_gconv(x, params["gc1"])
    y = _ref_bn_tanh(y, params["bn1"], N, H)
    for i in range(num_stage):
        blk = params["gcbs"][i]
        z = _ref_gconv(y, blk["gc1"])
        z = _ref_bn_tanh(z, blk["bn1"], N, H)
        z = _ref_gconv(z, blk["gc2"])
        z = _ref_bn_tanh(z, blk["bn2"], N, H)
        y = y + z
    y = _ref_gconv(y, params["gc7"])
    return y + x


# -----------------------------------------------------------------------------
if __name__ == "__main__":
    batch = 2
    node_n = 48          # default in the PyTorch module
    input_feature = 16
    hidden_feature = 32
    num_stage = 1

    key = jax.random.PRNGKey(0)
    k_params, k_x = jax.random.split(key)

    params = init_gcn_params(k_params, input_feature, hidden_feature,
                             num_stage, node_n)
    x = jax.random.normal(k_x, (batch, node_n, input_feature), jnp.float32)

    out = gcn_forward(params, x, num_stage)
    out = jax.block_until_ready(out)
    assert out.shape == (batch, node_n, input_feature)
    assert out.dtype == jnp.float32

    ref = jax.block_until_ready(gcn_forward_ref(params, x, num_stage))
    np.testing.assert_allclose(np.asarray(out), np.asarray(ref),
                               rtol=5e-2, atol=5e-2)

    print("KERNEL_OK")
</pallas_src>

<mosaic_0001>
module attributes {stable_mosaic.version = 11 : i64} {
  func.func @kernel(%arg0: memref<96x16xf32, #tpu.memory_space<vmem>>, %arg1: memref<496x128xf32, #tpu.memory_space<vmem>>, %arg2: memref<320x32xf32, #tpu.memory_space<vmem>>, %arg3: memref<96x16xf32, #tpu.memory_space<vmem>>) attributes {dimension_semantics = [], scalar_prefetch = 0 : i64, scratch_operands = 0 : i64, tpu.core_type = #tpu.core_type<tc>} {
    %c0 = arith.constant 0 : index
    %c0_0 = arith.constant 0 : index
    %0 = vector.load %arg0[%c0, %c0_0] : memref<96x16xf32, #tpu.memory_space<vmem>>, vector<96x16xf32>
    %c0_1 = arith.constant 0 : index
    %c0_2 = arith.constant 0 : index
    %1 = vector.load %arg1[%c0_1, %c0_2] : memref<496x128xf32, #tpu.memory_space<vmem>>, vector<16x32xf32>
    %c16 = arith.constant 16 : index
    %c0_3 = arith.constant 0 : index
    %2 = vector.load %arg1[%c16, %c0_3] : memref<496x128xf32, #tpu.memory_space<vmem>>, vector<96x96xf32>
    %c0_4 = arith.constant 0 : index
    %c0_5 = arith.constant 0 : index
    %3 = vector.load %arg2[%c0_4, %c0_5] : memref<320x32xf32, #tpu.memory_space<vmem>>, vector<1x32xf32>
    %cst = arith.constant dense<0.000000e+00> : vector<96x32xf32>
    %4 = tpu.matmul %0, %1, %cst {dimension_numbers = #tpu.dot_dimension_numbers<[1], [0], [0], [1], [0, 0, 1, 1], [], []>} : vector<96x16xf32>, vector<16x32xf32>, vector<96x32xf32> -> vector<96x32xf32>
    %cst_6 = arith.constant dense<0.000000e+00> : vector<96x32xf32>
    %5 = tpu.matmul %2, %4, %cst_6 {dimension_numbers = #tpu.dot_dimension_numbers<[1], [0], [0], [1], [0, 0, 1, 1], [], []>} : vector<96x96xf32>, vector<96x32xf32>, vector<96x32xf32> -> vector<96x32xf32>
    %6 = vector.broadcast %3 : vector<1x32xf32> to vector<96x32xf32>
    %7 = arith.addf %5, %6 : vector<96x32xf32>
    %c8 = arith.constant 8 : index
    %c0_7 = arith.constant 0 : index
    %8 = vector.load %arg2[%c8, %c0_7] : memref<320x32xf32, #tpu.memory_space<vmem>>, vector<48x32xf32>
    %c56 = arith.constant 56 : index
    %c0_8 = arith.constant 0 : index
    %9 = vector.load %arg2[%c56, %c0_8] : memref<320x32xf32, #tpu.memory_space<vmem>>, vector<48x32xf32>
    %10 = vector.extract_strided_slice %7 {offsets = [0, 0], sizes = [48, 32], strides = [1, 1]} : vector<96x32xf32> to vector<48x32xf32>
    %11 = vector.extract_strided_slice %7 {offsets = [48, 0], sizes = [48, 32], strides = [1, 1]} : vector<96x32xf32> to vector<48x32xf32>
    %12 = arith.addf %10, %11 : vector<48x32xf32>
    %cst_9 = arith.constant 5.000000e-01 : f32
    %13 = vector.broadcast %cst_9 : f32 to vector<48x32xf32>
    %14 = arith.mulf %12, %13 : vector<48x32xf32>
    %15 = vector.extract_strided_slice %7 {offsets = [0, 0], sizes = [48, 32], strides = [1, 1]} : vector<96x32xf32> to vector<48x32xf32>
    %16 = arith.subf %15, %14 : vector<48x32xf32>
    %17 = arith.mulf %16, %16 : vector<48x32xf32>
    %18 = vector.extract_strided_slice %7 {offsets = [48, 0], sizes = [48, 32], strides = [1, 1]} : vector<96x32xf32> to vector<48x32xf32>
    %19 = arith.subf %18, %14 : vector<48x32xf32>
    %20 = arith.mulf %19, %19 : vector<48x32xf32>
    %21 = arith.addf %17, %20 : vector<48x32xf32>
    %cst_10 = arith.constant 5.000000e-01 : f32
    %22 = vector.broadcast %cst_10 : f32 to vector<48x32xf32>
    %23 = arith.mulf %21, %22 : vector<48x32xf32>
    %cst_11 = arith.constant 9.99999974E-6 : f32
    %24 = vector.broadcast %cst_11 : f32 to vector<48x32xf32>
    %25 = arith.addf %23, %24 : vector<48x32xf32>
    %26 = math.rsqrt %25 : vector<48x32xf32>
    %27 = arith.mulf %8, %26 : vector<48x32xf32>
    %28 = arith.mulf %14, %27 : vector<48x32xf32>
    %29 = arith.subf %9, %28 : vector<48x32xf32>
    %30 = vector.extract_strided_slice %7 {offsets = [0, 0], sizes = [48, 32], strides = [1, 1]} : vector<96x32xf32> to vector<48x32xf32>
    %31 = arith.mulf %30, %27 : vector<48x32xf32>
    %32 = arith.addf %31, %29 : vector<48x32xf32>
    %33 = math.tanh %32 : vector<48x32xf32>
    %34 = vector.extract_strided_slice %7 {offsets = [48, 0], sizes = [48, 32], strides = [1, 1]} : vector<96x32xf32> to vector<48x32xf32>
    %35 = arith.mulf %34, %27 : vector<48x32xf32>
    %36 = arith.addf %35, %29 : vector<48x32xf32>
    %37 = math.tanh %36 : vector<48x32xf32>
    %38 = tpu.concatenate %33, %37 in 0 : vector<48x32xf32>, vector<48x32xf32> -> vector<96x32xf32>
    %c112 = arith.constant 112 : index
    %c0_12 = arith.constant 0 : index
    %39 = vector.load %arg1[%c112, %c0_12] : memref<496x128xf32, #tpu.memory_space<vmem>>, vector<32x32xf32>
    %c144 = arith.constant 144 : index
    %c0_13 = arith.constant 0 : index
    %40 = vector.load %arg1[%c144, %c0_13] : memref<496x128xf32, #tpu.memory_space<vmem>>, vector<96x96xf32>
    %c104 = arith.constant 104 : index
    %c0_14 = arith.constant 0 : index
    %41 = vector.load %arg2[%c104, %c0_14] : memref<320x32xf32, #tpu.memory_space<vmem>>, vector<1x32xf32>
    %cst_15 = arith.constant dense<0.000000e+00> : vector<96x32xf32>
    %42 = tpu.matmul %38, %39, %cst_15 {dimension_numbers = #tpu.dot_dimension_numbers<[1], [0], [0], [1], [0, 0, 1, 1], [], []>} : vector<96x32xf32>, vector<32x32xf32>, vector<96x32xf32> -> vector<96x32xf32>
    %cst_16 = arith.constant dense<0.000000e+00> : vector<96x32xf32>
    %43 = tpu.matmul %40, %42, %cst_16 {dimension_numbers = #tpu.dot_dimension_numbers<[1], [0], [0], [1], [0, 0, 1, 1], [], []>} : vector<96x96xf32>, vector<96x32xf32>, vector<96x32xf32> -> vector<96x32xf32>
    %44 = vector.broadcast %41 : vector<1x32xf32> to vector<96x32xf32>
    %45 = arith.addf %43, %44 : vector<96x32xf32>
    %c112_17 = arith.constant 112 : index
    %c0_18 = arith.constant 0 : index
    %46 = vector.load %arg2[%c112_17, %c0_18] : memref<320x32xf32, #tpu.memory_space<vmem>>, vector<48x32xf32>
    %c160 = arith.constant 160 : index
    %c0_19 = arith.constant 0 : index
    %47 = vector.load %arg2[%c160, %c0_19] : memref<320x32xf32, #tpu.memory_space<vmem>>, vector<48x32xf32>
    %48 = vector.extract_strided_slice %45 {offsets = [0, 0], sizes = [48, 32], strides = [1, 1]} : vector<96x32xf32> to vector<48x32xf32>
    %49 = vector.extract_strided_slice %45 {offsets = [48, 0], sizes = [48, 32], strides = [1, 1]} : vector<96x32xf32> to vector<48x32xf32>
    %50 = arith.addf %48, %49 : vector<48x32xf32>
    %cst_20 = arith.constant 5.000000e-01 : f32
    %51 = vector.broadcast %cst_20 : f32 to vector<48x32xf32>
    %52 = arith.mulf %50, %51 : vector<48x32xf32>
    %53 = vector.extract_strided_slice %45 {offsets = [0, 0], sizes = [48, 32], strides = [1, 1]} : vector<96x32xf32> to vector<48x32xf32>
    %54 = arith.subf %53, %52 : vector<48x32xf32>
    %55 = arith.mulf %54, %54 : vector<48x32xf32>
    %56 = vector.extract_strided_slice %45 {offsets = [48, 0], sizes = [48, 32], strides = [1, 1]} : vector<96x32xf32> to vector<48x32xf32>
    %57 = arith.subf %56, %52 : vector<48x32xf32>
    %58 = arith.mulf %57, %57 : vector<48x32xf32>
    %59 = arith.addf %55, %58 : vector<48x32xf32>
    %cst_21 = arith.constant 5.000000e-01 : f32
    %60 = vector.broadcast %cst_21 : f32 to vector<48x32xf32>
    %61 = arith.mulf %59, %60 : vector<48x32xf32>
    %cst_22 = arith.constant 9.99999974E-6 : f32
    %62 = vector.broadcast %cst_22 : f32 to vector<48x32xf32>
    %63 = arith.addf %61, %62 : vector<48x32xf32>
    %64 = math.rsqrt %63 : vector<48x32xf32>
    %65 = arith.mulf %46, %64 : vector<48x32xf32>
    %66 = arith.mulf %52, %65 : vector<48x32xf32>
    %67 = arith.subf %47, %66 : vector<48x32xf32>
    %68 = vector.extract_strided_slice %45 {offsets = [0, 0], sizes = [48, 32], strides = [1, 1]} : vector<96x32xf32> to vector<48x32xf32>
    %69 = arith.mulf %68, %65 : vector<48x32xf32>
    %70 = arith.addf %69, %67 : vector<48x32xf32>
    %71 = math.tanh %70 : vector<48x32xf32>
    %72 = vector.extract_strided_slice %45 {offsets = [48, 0], sizes = [48, 32], strides = [1, 1]} : vector<96x32xf32> to vector<48x32xf32>
    %73 = arith.mulf %72, %65 : vector<48x32xf32>
    %74 = arith.addf %73, %67 : vector<48x32xf32>
    %75 = math.tanh %74 : vector<48x32xf32>
    %76 = tpu.concatenate %71, %75 in 0 : vector<48x32xf32>, vector<48x32xf32> -> vector<96x32xf32>
    %c240 = arith.constant 240 : index
    %c0_23 = arith.constant 0 : index
    %77 = vector.load %arg1[%c240, %c0_23] : memref<496x128xf32, #tpu.memory_space<vmem>>, vector<32x32xf32>
    %c272 = arith.constant 272 : index
    %c0_24 = arith.constant 0 : index
    %78 = vector.load %arg1[%c272, %c0_24] : memref<496x128xf32, #tpu.memory_space<vmem>>, vector<96x96xf32>
    %c208 = arith.constant 208 : index
    %c0_25 = arith.constant 0 : index
    %79 = vector.load %arg2[%c208, %c0_25] : memref<320x32xf32, #tpu.memory_space<vmem>>, vector<1x32xf32>
    %cst_26 = arith.constant dense<0.000000e+00> : vector<96x32xf32>
    %80 = tpu.matmul %76, %77, %cst_26 {dimension_numbers = #tpu.dot_dimension_numbers<[1], [0], [0], [1], [0, 0, 1, 1], [], []>} : vector<96x32xf32>, vector<32x32xf32>, vector<96x32xf32> -> vector<96x32xf32>
    %cst_27 = arith.constant dense<0.000000e+00> : vector<96x32xf32>
    %81 = tpu.matmul %78, %80, %cst_27 {dimension_numbers = #tpu.dot_dimension_numbers<[1], [0], [0], [1], [0, 0, 1, 1], [], []>} : vector<96x96xf32>, vector<96x32xf32>, vector<96x32xf32> -> vector<96x32xf32>
    %82 = vector.broadcast %79 : vector<1x32xf32> to vector<96x32xf32>
    %83 = arith.addf %81, %82 : vector<96x32xf32>
    %c216 = arith.constant 216 : index
    %c0_28 = arith.constant 0 : index
    %84 = vector.load %arg2[%c216, %c0_28] : memref<320x32xf32, #tpu.memory_space<vmem>>, vector<48x32xf32>
    %c264 = arith.constant 264 : index
    %c0_29 = arith.constant 0 : index
    %85 = vector.load %arg2[%c264, %c0_29] : memref<320x32xf32, #tpu.memory_space<vmem>>, vector<48x32xf32>
    %86 = vector.extract_strided_slice %83 {offsets = [0, 0], sizes = [48, 32], strides = [1, 1]} : vector<96x32xf32> to vector<48x32xf32>
    %87 = vector.extract_strided_slice %83 {offsets = [48, 0], sizes = [48, 32], strides = [1, 1]} : vector<96x32xf32> to vector<48x32xf32>
    %88 = arith.addf %86, %87 : vector<48x32xf32>
    %cst_30 = arith.constant 5.000000e-01 : f32
    %89 = vector.broadcast %cst_30 : f32 to vector<48x32xf32>
    %90 = arith.mulf %88, %89 : vector<48x32xf32>
    %91 = vector.extract_strided_slice %83 {offsets = [0, 0], sizes = [48, 32], strides = [1, 1]} : vector<96x32xf32> to vector<48x32xf32>
    %92 = arith.subf %91, %90 : vector<48x32xf32>
    %93 = arith.mulf %92, %92 : vector<48x32xf32>
    %94 = vector.extract_strided_slice %83 {offsets = [48, 0], sizes = [48, 32], strides = [1, 1]} : vector<96x32xf32> to vector<48x32xf32>
    %95 = arith.subf %94, %90 : vector<48x32xf32>
    %96 = arith.mulf %95, %95 : vector<48x32xf32>
    %97 = arith.addf %93, %96 : vector<48x32xf32>
    %cst_31 = arith.constant 5.000000e-01 : f32
    %98 = vector.broadcast %cst_31 : f32 to vector<48x32xf32>
    %99 = arith.mulf %97, %98 : vector<48x32xf32>
    %cst_32 = arith.constant 9.99999974E-6 : f32
    %100 = vector.broadcast %cst_32 : f32 to vector<48x32xf32>
    %101 = arith.addf %99, %100 : vector<48x32xf32>
    %102 = math.rsqrt %101 : vector<48x32xf32>
    %103 = arith.mulf %84, %102 : vector<48x32xf32>
    %104 = arith.mulf %90, %103 : vector<48x32xf32>
    %105 = arith.subf %85, %104 : vector<48x32xf32>
    %106 = vector.extract_strided_slice %83 {offsets = [0, 0], sizes = [48, 32], strides = [1, 1]} : vector<96x32xf32> to vector<48x32xf32>
    %107 = arith.mulf %106, %103 : vector<48x32xf32>
    %108 = arith.addf %107, %105 : vector<48x32xf32>
    %109 = math.tanh %108 : vector<48x32xf32>
    %110 = vector.extract_strided_slice %83 {offsets = [48, 0], sizes = [48, 32], strides = [1, 1]} : vector<96x32xf32> to vector<48x32xf32>
    %111 = arith.mulf %110, %103 : vector<48x32xf32>
    %112 = arith.addf %111, %105 : vector<48x32xf32>
    %113 = math.tanh %112 : vector<48x32xf32>
    %114 = tpu.concatenate %109, %113 in 0 : vector<48x32xf32>, vector<48x32xf32> -> vector<96x32xf32>
    %115 = arith.addf %38, %114 : vector<96x32xf32>
    %c368 = arith.constant 368 : index
    %c0_33 = arith.constant 0 : index
    %116 = vector.load %arg1[%c368, %c0_33] : memref<496x128xf32, #tpu.memory_space<vmem>>, vector<32x16xf32>
    %c400 = arith.constant 400 : index
    %c0_34 = arith.constant 0 : index
    %117 = vector.load %arg1[%c400, %c0_34] : memref<496x128xf32, #tpu.memory_space<vmem>>, vector<96x96xf32>
    %c312 = arith.constant 312 : index
    %c0_35 = arith.constant 0 : index
    %118 = vector.load %arg2[%c312, %c0_35] : memref<320x32xf32, #tpu.memory_space<vmem>>, vector<1x16xf32>
    %cst_36 = arith.constant dense<0.000000e+00> : vector<96x16xf32>
    %119 = tpu.matmul %115, %116, %cst_36 {dimension_numbers = #tpu.dot_dimension_numbers<[1], [0], [0], [1], [0, 0, 1, 1], [], []>} : vector<96x32xf32>, vector<32x16xf32>, vector<96x16xf32> -> vector<96x16xf32>
    %cst_37 = arith.constant dense<0.000000e+00> : vector<96x16xf32>
    %120 = tpu.matmul %117, %119, %cst_37 {dimension_numbers = #tpu.dot_dimension_numbers<[1], [0], [0], [1], [0, 0, 1, 1], [], []>} : vector<96x96xf32>, vector<96x16xf32>, vector<96x16xf32> -> vector<96x16xf32>
    %121 = vector.broadcast %118 : vector<1x16xf32> to vector<96x16xf32>
    %122 = arith.addf %120, %121 : vector<96x16xf32>
    %123 = arith.addf %122, %0 : vector<96x16xf32>
    %c0_38 = arith.constant 0 : index
    %c0_39 = arith.constant 0 : index
    %124 = vector.load %arg3[%c0_38, %c0_39] : memref<96x16xf32, #tpu.memory_space<vmem>>, vector<96x16xf32>
    tpu.vector_store %arg3[%c0_38, %c0_39], %123 {strides = array<i32>} : memref<96x16xf32, #tpu.memory_space<vmem>>, vector<96x16xf32>,
    return
  }
}

</mosaic_0001>

<bundles_post_ra>
// kernel: gcn_forward.1
= control target key start
LH: loop header
LB: loop body
LE: loop exit
PB: predicated region body
PF: predicated region fallthrough
CT: control target
= control target key end

     0   :  { %vm41_vm0 = vcmask 130048   ;;  %vm207_vm1 = vcmask 785408   ;;  %vm512_vm2 = vcmask 261120   ;;  %s3459_s1 = inlined_call_operand.vmem [shape: f32[496,128], index: 1, kind: input, shape index: {}]   ;;  %s3460_s0 = inlined_call_operand.vmem [shape: f32[96,16], index: 0, kind: input, shape index: {}]   ;;  %s3461_s2 = inlined_call_operand.vmem [shape: f32[320,32], index: 2, kind: input, shape index: {}]   ;;  %s3462_s3 = inlined_call_operand.vmem [shape: f32[96,16], index: 3, kind: output, shape index: {}]  }
   0x1   :  { %v26_v0 = vld [vmem:[%s3459_s1] sm:$0xff]  ;;  %v27_v1 = vld [vmem:[%s3459_s1 + $0x8] sm:$0xff]  ;;  %v16_v5 = vld [vmem:[%s3460_s0 + $0x10] sm:$0xff] }
   0x2   :  { %v14_v2 = vld [vmem:[%s3460_s0] sm:$0xff]  ;;  %v2343_v3 = vpack.c.bf16 %v27_v1, %v26_v0  ;;  %v15_v4 = vld [vmem:[%s3460_s0 + $0x8] sm:$0xff]  ;;  %v17_v6 = vld [vmem:[%s3460_s0 + $0x18] sm:$0xff] }
   0x3   :  { %2079 = vmatprep.mubr.msk.f32.mxu0 %vm41_vm0, %v14_v2  ;;  %v18_v7 = vld [vmem:[%s3460_s0 + $0x20] sm:$0xff]  ;;  %v19_v8 = vld [vmem:[%s3460_s0 + $0x28] sm:$0xff]  ;;  %v20_v9 = vld [vmem:[%s3460_s0 + $0x30] sm:$0xff] }
   0x4   :  { %2344 = vmatprep.subr.bf16.mxu0 %v2343_v3  ;;  %v21_v10 = vld [vmem:[%s3460_s0 + $0x38] sm:$0xff]  ;;  %v22_v11 = vld [vmem:[%s3460_s0 + $0x40] sm:$0xff]  ;;  %v23_v12 = vld [vmem:[%s3460_s0 + $0x48] sm:$0xff] }
   0x5   :  { %2346 = vmatpush3.bf16.msra.mxu0 %v2343_v3  ;;  %v24_v13 = vld [vmem:[%s3460_s0 + $0x50] sm:$0xff]  ;;  %v25_v14 = vld [vmem:[%s3460_s0 + $0x58] sm:$0xff]  ;;  %v30_v35 = vld [vmem:[%s3459_s1 + $0x20] sm:$0xff] }
   0x6   :  { %v28_v15 = vld [vmem:[%s3459_s1 + $0x10] sm:$0xff]  ;;  %v29_v34 = vld [vmem:[%s3459_s1 + $0x18] sm:$0xff]  ;;  %v31_v36 = vld [vmem:[%s3459_s1 + $0x28] sm:$0xff] }
   0x7   :  { %2121 = vmatprep.mubr.msk.f32.mxu1 %vm207_vm1, %v28_v15  ;;  %v32_v37 = vld [vmem:[%s3459_s1 + $0x30] sm:$0xff]  ;;  %v33_v38 = vld [vmem:[%s3459_s1 + $0x38] sm:$0xff]  ;;  %v34_v39 = vld [vmem:[%s3459_s1 + $0x40] sm:$0xff] }
   0x8   :  { %2080 = vmatmul.mubr.msk.f32.vlgmr.msra.gmra.mrb[0].mxu0 %vm41_vm0, %v15_v4  ;;  %v35_v40 = vld [vmem:[%s3459_s1 + $0x48] sm:$0xff]  ;;  %v36_v41 = vld [vmem:[%s3459_s1 + $0x50] sm:$0xff]  ;;  %v37_v42 = vld [vmem:[%s3459_s1 + $0x58] sm:$0xff] }
   0x9   :  { %2082 = vmatprep.mubr.msk.f32.mxu0 %vm41_vm0, %v16_v5  ;;  %v38_v43 = vld [vmem:[%s3459_s1 + $0x60] sm:$0xff]  ;;  %v39_v44 = vld [vmem:[%s3459_s1 + $0x68] sm:$0xff]  ;;  %v495_v45 = vld [vmem:[%s3459_s1 + $0x70] sm:$0xff] }
   0xa   :  { %v496_v46 = vld [vmem:[%s3459_s1 + $0x78] sm:$0xff]  ;;  %v497_v48 = vld [vmem:[%s3459_s1 + $0x80] sm:$0xff]  ;;  %v498_v49 = vld [vmem:[%s3459_s1 + $0x88] sm:$0xff] }
   0xb   :  { %v2371_v47 = vpack.c.bf16 %v496_v46, %v495_v45  ;;  %v2375_v50 = vpack.c.bf16 %v498_v49, %v497_v48  ;;  %v1829_v57 = vld [vmem:[%s3461_s2] ss:$0 sm:$0xff] }
   0xc   :  { %2083 = vmatmul.mubr.msk.f32.gmra.mrb[2].mxu0 %vm41_vm0, %v17_v6 }
   0xd   :  { %2085 = vmatprep.mubr.msk.f32.mxu0 %vm41_vm0, %v18_v7  ;;  %2372 = vmatprep.subr.bf16.mxu0 %v2371_v47 }
   0xe   :  { %2374 = vmatpush3.bf16.msra.mxu0 %v2371_v47 }
   0xf   :  { %2376 = vmatprep.subr.bf16.mxu0 %v2375_v50 }
  0x10   :  { %2086 = vmatmul.mubr.msk.f32.gmra.mrb[4].mxu0 %vm41_vm0, %v19_v8 }
  0x11   :  { %2088 = vmatprep.mubr.msk.f32.mxu0 %vm41_vm0, %v20_v9 }
  0x12   :  { %2378 = vmatpush3.bf16.msra.mxu0 %v2375_v50 }
  0x14   :  { %2089 = vmatmul.mubr.msk.f32.gmra.mrb[6].mxu0 %vm41_vm0, %v21_v10 }
  0x15   :  { %2091 = vmatprep.mubr.msk.f32.mxu0 %vm41_vm0, %v22_v11 }
  0x18   :  { %2092 = vmatmul.mubr.msk.f32.gmra.mrb[8].mxu0 %vm41_vm0, %v23_v12 }
  0x19   :  { %2094 = vmatprep.mubr.msk.f32.mxu0 %vm41_vm0, %v24_v13 }
  0x1c   :  { %2095 = vmatmul.mubr.msk.f32.gmra.mrb[10].mxu0 %vm41_vm0, %v25_v14 }
  0xdb   :  { %v2081_v16 = vpop.f32.mrb[0].mxu0 }
  0xdc   :  { %v144_v17 = vpop.f32.mrb[1].mxu0 }
  0xdd   :  { %v2347_v18 = vpack.c.bf16 %v2081_v16, %v144_v17 }
  0xdf   :  { %v2084_v19 = vpop.f32.mrb[2].mxu0  ;;  %2348 = vmatprep.subr.bf16.mxu1 %v2347_v18 }
  0xe0   :  { %v154_v20 = vpop.f32.mrb[3].mxu0  ;;  %2350 = vmatpush3.bf16.msra.mxu1 %v2347_v18 }
  0xe1   :  { %v2351_v21 = vpack.c.bf16 %v2084_v19, %v154_v20 }
  0xe3   :  { %v2087_v22 = vpop.f32.mrb[4].mxu0  ;;  %2352 = vmatprep.subr.bf16.mxu1 %v2351_v21 }
  0xe4   :  { %v164_v23 = vpop.f32.mrb[5].mxu0  ;;  %2354 = vmatpush3.bf16.msra.mxu1 %v2351_v21 }
  0xe5   :  { %v2355_v24 = vpack.c.bf16 %v2087_v22, %v164_v23 }
  0xe7   :  { %v2090_v25 = vpop.f32.mrb[6].mxu0  ;;  %2356 = vmatprep.subr.bf16.mxu1 %v2355_v24 }
  0xe8   :  { %v174_v26 = vpop.f32.mrb[7].mxu0  ;;  %2358 = vmatpush3.bf16.msra.mxu1 %v2355_v24 }
  0xe9   :  { %v2359_v27 = vpack.c.bf16 %v2090_v25, %v174_v26 }
  0xeb   :  { %v2093_v28 = vpop.f32.mrb[8].mxu0  ;;  %2360 = vmatprep.subr.bf16.mxu1 %v2359_v27 }
  0xec   :  { %v184_v29 = vpop.f32.mrb[9].mxu0  ;;  %2362 = vmatpush3.bf16.msra.mxu1 %v2359_v27 }
  0xed   :  { %v2363_v30 = vpack.c.bf16 %v2093_v28, %v184_v29 }
  0xef   :  { %v2096_v31 = vpop.f32.mrb[10].mxu0  ;;  %2364 = vmatprep.subr.bf16.mxu1 %v2363_v30 }
  0xf0   :  { %v194_v32 = vpop.f32.mrb[11].mxu0  ;;  %2366 = vmatpush3.bf16.msra.mxu1 %v2363_v30 }
  0xf1   :  { %v2367_v33 = vpack.c.bf16 %v2096_v31, %v194_v32 }
  0xf3   :  { %2368 = vmatprep.subr.bf16.mxu1 %v2367_v33 }
  0xf4   :  { %2370 = vmatpush3.bf16.msra.mxu1 %v2367_v33 }
  0xf7   :  { %2122 = vmatmul.mubr.msk.f32.vlgmr.msra.gmra.mrb[0].mxu1 %vm207_vm1, %v29_v34 }
  0xf8   :  { %2124 = vmatprep.mubr.msk.f32.mxu1 %vm207_vm1, %v30_v35 }
  0xfb   :  { %2125 = vmatmul.mubr.msk.f32.gmra.mrb[2].mxu1 %vm207_vm1, %v31_v36 }
  0xfc   :  { %2127 = vmatprep.mubr.msk.f32.mxu1 %vm207_vm1, %v32_v37 }
  0xff   :  { %2128 = vmatmul.mubr.msk.f32.gmra.mrb[4].mxu1 %vm207_vm1, %v33_v38 }
 0x100   :  { %2130 = vmatprep.mubr.msk.f32.mxu1 %vm207_vm1, %v34_v39 }
 0x103   :  { %2131 = vmatmul.mubr.msk.f32.gmra.mrb[6].mxu1 %vm207_vm1, %v35_v40 }
 0x104   :  { %2133 = vmatprep.mubr.msk.f32.mxu1 %vm207_vm1, %v36_v41 }
 0x107   :  { %2134 = vmatmul.mubr.msk.f32.gmra.mrb[8].mxu1 %vm207_vm1, %v37_v42 }
 0x108   :  { %2136 = vmatprep.mubr.msk.f32.mxu1 %vm207_vm1, %v38_v43 }
 0x10b   :  { %2137 = vmatmul.mubr.msk.f32.gmra.mrb[10].mxu1 %vm207_vm1, %v39_v44 }
 0x1ca   :  { %v2123_v51 = vpop.f32.mrb[0].mxu1 }
 0x1cb   :  { %v310_v52 = vpop.f32.mrb[1].mxu1  ;;  %v2736_v59 = vadd.f32 %v2123_v51, %v1829_v57 }
 0x1cc   :  { %v2740_v62 = vadd.f32 %v1829_v57, %v310_v52 }
 0x1ce   :  { %v2126_v53 = vpop.f32.mrb[2].mxu1 }
 0x1cf   :  { %v320_v54 = vpop.f32.mrb[3].mxu1  ;;  %v2748_v3 = vadd.f32 %v2126_v53, %v1829_v57 }
 0x1d0   :  { %v2754_v7 = vadd.f32 %v1829_v57, %v320_v54 }
 0x1d2   :  { %v2129_v55 = vpop.f32.mrb[4].mxu1 }
 0x1d3   :  { %v330_v56 = vpop.f32.mrb[5].mxu1  ;;  %v2760_v10 = vadd.f32 %v2129_v55, %v1829_v57 }
 0x1d4   :  { %v2768_v14 = vadd.f32 %v1829_v57, %v330_v56 }
 0x1d6   :  { %v2132_v58 = vpop.f32.mrb[6].mxu1 }
 0x1d7   :  { %v2738_v60 = vadd.f32 %v2132_v58, %v1829_v57  ;;  %v340_v61 = vpop.f32.mrb[7].mxu1 }
 0x1d8   :  { %v2742_v63 = vadd.f32 %v1829_v57, %v340_v61 }
 0x1d9   :  { %v382_v0 = vadd.f32 %v2738_v60, %v2736_v59 }
 0x1da   :  { %v381_v1 = vadd.f32 %v2742_v63, %v2740_v62  ;;  %v2135_v2 = vpop.f32.mrb[8].mxu1 }
 0x1db   :  { %v2750_v4 = vmul.f32 0.5, %v382_v0  ;;  %v2752_v5 = vadd.f32 %v2135_v2, %v1829_v57  ;;  %v350_v6 = vpop.f32.mrb[9].mxu1 }
 0x1dc   :  { %v2756_v8 = vmul.f32 0.5, %v381_v1  ;;  %v2758_v9 = vadd.f32 %v1829_v57, %v350_v6 }
 0x1dd   :  { %v394_v11 = vsub.f32 %v2736_v59, %v2750_v4  ;;  %v406_v12 = vsub.f32 %v2738_v60, %v2750_v4  ;;  %v384_v13 = vadd.f32 %v2752_v5, %v2748_v3 }
 0x1de   :  { %v393_v15 = vsub.f32 %v2740_v62, %v2756_v8  ;;  %v405_v16 = vsub.f32 %v2742_v63, %v2756_v8  ;;  %v383_v17 = vadd.f32 %v2758_v9, %v2754_v7  ;;  %v2138_v18 = vpop.f32.mrb[10].mxu1 }
 0x1df   :  { %v400_v19 = vmul.f32 %v394_v11, %v394_v11  ;;  %v412_v20 = vmul.f32 %v406_v12, %v406_v12  ;;  %v2776_v21 = vmul.f32 0.5, %v384_v13  ;;  %v2778_v22 = vadd.f32 %v2138_v18, %v1829_v57  ;;  %v360_v23 = vpop.f32.mrb[11].mxu1  ;;  %v370_v13 = vld [vmem:[%s3461_s2 + $0x10] sm:$0xff] }
 0x1e0   :  { %v399_v24 = vmul.f32 %v393_v15, %v393_v15  ;;  %v411_v25 = vmul.f32 %v405_v16, %v405_v16  ;;  %v2780_v26 = vmul.f32 0.5, %v383_v17  ;;  %v2782_v27 = vadd.f32 %v1829_v57, %v360_v23  ;;  %v369_v15 = vld [vmem:[%s3461_s2 + $0x8] sm:$0xff]  ;;  %v372_v23 = vld [vmem:[%s3461_s2 + $0x20] sm:$0xff] }
 0x1e1   :  { %v418_v28 = vadd.f32 %v412_v20, %v400_v19  ;;  %v396_v29 = vsub.f32 %v2748_v3, %v2776_v21  ;;  %v408_v30 = vsub.f32 %v2752_v5, %v2776_v21  ;;  %v386_v31 = vadd.f32 %v2778_v22, %v2760_v10  ;;  %v376_v19 = vld [vmem:[%s3461_s2 + $0x40] sm:$0xff] }
 0x1e2   :  { %v417_v32 = vadd.f32 %v411_v25, %v399_v24  ;;  %v395_v33 = vsub.f32 %v2754_v7, %v2780_v26  ;;  %v407_v34 = vsub.f32 %v2758_v9, %v2780_v26  ;;  %v385_v35 = vadd.f32 %v2782_v27, %v2768_v14 }
 0x1e3   :  { %v424_v36 = vmul.f32 0.5, %v418_v28  ;;  %v402_v37 = vmul.f32 %v396_v29, %v396_v29  ;;  %v414_v38 = vmul.f32 %v408_v30, %v408_v30  ;;  %v2796_v39 = vmul.f32 0.5, %v386_v31  ;;  %v375_v29 = vld [vmem:[%s3461_s2 + $0x38] sm:$0xff] }
 0x1e4   :  { %v423_v40 = vmul.f32 0.5, %v417_v32  ;;  %v401_v41 = vmul.f32 %v395_v33, %v395_v33  ;;  %v413_v42 = vmul.f32 %v407_v34, %v407_v34  ;;  %v2798_v43 = vmul.f32 0.5, %v385_v35  ;;  %v371_v30 = vld [vmem:[%s3461_s2 + $0x18] sm:$0xff] }
 0x1e5   :  { %v430_v44 = vadd.f32 1e-05, %v424_v36  ;;  %v420_v45 = vadd.f32 %v414_v38, %v402_v37  ;;  %v398_v46 = vsub.f32 %v2760_v10, %v2796_v39  ;;  %v410_v47 = vsub.f32 %v2778_v22, %v2796_v39 }
 0x1e6   :  { %v429_v48 = vadd.f32 1e-05, %v423_v40  ;;  %v419_v49 = vadd.f32 %v413_v42, %v401_v41  ;;  %v397_v50 = vsub.f32 %v2768_v14, %v2798_v43  ;;  %v409_v51 = vsub.f32 %v2782_v27, %v2798_v43 }
 0x1e7   :  { %2479 = vrsqrt.f32 %v430_v44  ;;  %v426_v52 = vmul.f32 0.5, %v420_v45  ;;  %v404_v53 = vmul.f32 %v398_v46, %v398_v46  ;;  %v416_v54 = vmul.f32 %v410_v47, %v410_v47 }
 0x1e8   :  { %2481 = vrsqrt.f32 %v429_v48  ;;  %v425_v55 = vmul.f32 0.5, %v419_v49  ;;  %v403_v56 = vmul.f32 %v397_v50, %v397_v50  ;;  %v415_v57 = vmul.f32 %v409_v51, %v409_v51 }
 0x1e9   :  { %v432_v58 = vadd.f32 1e-05, %v426_v52  ;;  %v422_v61 = vadd.f32 %v416_v54, %v404_v53 }
 0x1ea   :  { %v431_v0 = vadd.f32 1e-05, %v425_v55  ;;  %v421_v1 = vadd.f32 %v415_v57, %v403_v56  ;;  %v380_v56 = vld [vmem:[%s3461_s2 + $0x60] sm:$0xff] }
 0x1eb   :  { %2483 = vrsqrt.f32 %v432_v58  ;;  %v428_v2 = vmul.f32 0.5, %v422_v61 }
 0x1ec   :  { %2485 = vrsqrt.f32 %v431_v0  ;;  %v427_v6 = vmul.f32 0.5, %v421_v1 }
 0x1ed   :  { %v434_v11 = vadd.f32 1e-05, %v428_v2 }
 0x1ee   :  { %v433_v12 = vadd.f32 1e-05, %v427_v6 }
 0x1ef   :  { %2487 = vrsqrt.f32 %v434_v11 }
 0x1f0   :  { %2489 = vrsqrt.f32 %v433_v12 }
 0x1f1   :  { %v2480_v16 = vpop.eup %2479 }
 0x1f2   :  { %v2482_v17 = vpop.eup %2481  ;;  %v442_v18 = vmul.f32 %v2480_v16, %v370_v13 }
 0x1f3   :  { %v441_v20 = vmul.f32 %v2482_v17, %v369_v15 }
 0x1f4   :  { %v448_v24 = vmul.f32 %v442_v18, %v2750_v4  ;;  %v460_v25 = vmul.f32 %v442_v18, %v2736_v59  ;;  %v478_v28 = vmul.f32 %v442_v18, %v2738_v60  ;;  %v378_v60 = vld [vmem:[%s3461_s2 + $0x50] sm:$0xff] }
 0x1f5   :  { %v2484_v31 = vpop.eup %2483  ;;  %v447_v32 = vmul.f32 %v441_v20, %v2756_v8  ;;  %v459_v33 = vmul.f32 %v441_v20, %v2740_v62  ;;  %v477_v34 = vmul.f32 %v441_v20, %v2742_v63  ;;  %v377_v62 = vld [vmem:[%s3461_s2 + $0x48] sm:$0xff]  ;;  %v374_v63 = vld [vmem:[%s3461_s2 + $0x30] sm:$0xff] }
 0x1f6   :  { %v2486_v4 = vpop.eup %2485  ;;  %v454_v35 = vsub.f32 %v376_v19, %v448_v24  ;;  %v444_v59 = vmul.f32 %v2484_v31, %v372_v23  ;;  %v373_v8 = vld [vmem:[%s3461_s2 + $0x28] sm:$0xff]  ;;  %v499_v24 = vld [vmem:[%s3459_s1 + $0x90] sm:$0xff] }
 0x1f7   :  { %v453_v36 = vsub.f32 %v375_v29, %v447_v32  ;;  %v443_v37 = vmul.f32 %v2486_v4, %v371_v30  ;;  %2189 = vmatprep.mubr.msk.f32.mxu1 %vm207_vm1, %v499_v24 }
 0x1f8   :  { %v466_v38 = vadd.f32 %v460_v25, %v454_v35  ;;  %v484_v40 = vadd.f32 %v478_v28, %v454_v35  ;;  %v450_v41 = vmul.f32 %v444_v59, %v2776_v21  ;;  %v462_v42 = vmul.f32 %v444_v59, %v2748_v3 }
 0x1f9   :  { %v2488_v44 = vpop.eup %2487  ;;  %v465_v45 = vadd.f32 %v459_v33, %v453_v36  ;;  %v483_v46 = vadd.f32 %v477_v34, %v453_v36  ;;  %v480_v47 = vmul.f32 %v444_v59, %v2752_v5  ;;  %v449_v21 = vmul.f32 %v443_v37, %v2780_v26 }
 0x1fa   :  { %v2490_v3 = vpop.eup %2489  ;;  %v456_v48 = vsub.f32 %v378_v60, %v450_v41  ;;  %v461_v49 = vmul.f32 %v443_v37, %v2754_v7  ;;  %v479_v50 = vmul.f32 %v443_v37, %v2758_v9  ;;  %v446_v52 = vmul.f32 %v2488_v44, %v374_v63  ;;  %v379_v7 = vld [vmem:[%s3461_s2 + $0x58] sm:$0xff]  ;;  %v501_v63 = vld [vmem:[%s3459_s1 + $0xa0] sm:$0xff]  ;;  %v503_v44 = vld [vmem:[%s3459_s1 + $0xb0] sm:$0xff] }
 0x1fb   :  { %v455_v51 = vsub.f32 %v377_v62, %v449_v21  ;;  %v445_v53 = vmul.f32 %v2490_v3, %v373_v8  ;;  %2491 = vtanh.f32 %v465_v45  ;;  %v500_v62 = vld [vmem:[%s3459_s1 + $0x98] sm:$0xff]  ;;  %v502_v8 = vld [vmem:[%s3459_s1 + $0xa8] sm:$0xff]  ;;  %v507_v21 = vld [vmem:[%s3459_s1 + $0xd0] sm:$0xff] }
 0x1fc   :  { %v468_v54 = vadd.f32 %v462_v42, %v456_v48  ;;  %v486_v55 = vadd.f32 %v480_v47, %v456_v48  ;;  %2493 = vtanh.f32 %v466_v38  ;;  %v452_v26 = vmul.f32 %v446_v52, %v2796_v39  ;;  %v504_v45 = vld [vmem:[%s3459_s1 + $0xb8] sm:$0xff]  ;;  %v506_v47 = vld [vmem:[%s3459_s1 + $0xc8] sm:$0xff]  ;;  %v509_v48 = vld [vmem:[%s3459_s1 + $0xe0] sm:$0xff] }
 0x1fd   :  { %v467_v5 = vadd.f32 %v461_v49, %v455_v51  ;;  %v485_v57 = vadd.f32 %v479_v50, %v455_v51  ;;  %v464_v9 = vmul.f32 %v446_v52, %v2760_v10  ;;  %v482_v58 = vmul.f32 %v446_v52, %v2778_v22  ;;  %v508_v3 = vld [vmem:[%s3459_s1 + $0xd8] sm:$0xff]  ;;  %v510_v49 = vld [vmem:[%s3459_s1 + $0xe8] sm:$0xff]  ;;  %v965_v50 = vld [vmem:[%s3459_s1 + $0xf0] sm:$0xff] }
 0x1fe   :  { %v451_v61 = vmul.f32 %v445_v53, %v2798_v43  ;;  %v458_v0 = vsub.f32 %v380_v56, %v452_v26  ;;  %v463_v1 = vmul.f32 %v445_v53, %v2768_v14  ;;  %v481_v2 = vmul.f32 %v445_v53, %v2782_v27  ;;  %v966_v51 = vld [vmem:[%s3459_s1 + $0xf8] sm:$0xff]  ;;  %v967_v53 = vld [vmem:[%s3459_s1 + $0x100] sm:$0xff] }
 0x1ff   :  { %2495 = vtanh.f32 %v467_v5  ;;  %v2403_v52 = vpack.c.bf16 %v966_v51, %v965_v50 }
 0x200   :  { %v457_v6 = vsub.f32 %v379_v7, %v451_v61  ;;  %2497 = vtanh.f32 %v468_v54  ;;  %v470_v11 = vadd.f32 %v464_v9, %v458_v0  ;;  %v488_v39 = vadd.f32 %v482_v58, %v458_v0  ;;  %v968_v54 = vld [vmem:[%s3459_s1 + $0x108] sm:$0xff] }
 0x201   :  { %2404 = vmatprep.subr.bf16.mxu0 %v2403_v52  ;;  %v1854_v58 = vld [vmem:[%s3461_s2 + $0x68] ss:$0 sm:$0xff] }
 0x202   :  { %v469_v12 = vadd.f32 %v463_v1, %v457_v6  ;;  %v487_v13 = vadd.f32 %v481_v2, %v457_v6 }
 0x204   :  { %2499 = vtanh.f32 %v469_v12 }
 0x205   :  { %v2862_v15 = vpop.eup %2491  ;;  %2501 = vtanh.f32 %v470_v11 }
 0x206   :  { %v2864_v10 = vpop.eup %2493  ;;  %2503 = vtanh.f32 %v483_v46  ;;  %2147 = vmatprep.mubr.msk.f32.mxu0 %vm512_vm2, %v2862_v15  ;;  %v505_v46 = vld [vmem:[%s3459_s1 + $0xc0] sm:$0xff] }
 0x207   :  { %2148 = vmatmul.mubr.msk.f32.vlgmr.msra.gmra.mrb[12].mxu0 %vm512_vm2, %v2864_v10  ;;  %2505 = vtanh.f32 %v484_v40 }
 0x208   :  { %2507 = vtanh.f32 %v485_v57  ;;  %2406 = vmatpush3.bf16.msra.mxu0 %v2403_v52 }
 0x209   :  { %v2870_v14 = vpop.eup %2495  ;;  %2509 = vtanh.f32 %v486_v55  ;;  %v2407_v55 = vpack.c.bf16 %v968_v54, %v967_v53 }
 0x20a   :  { %v2872_v22 = vpop.eup %2497  ;;  %2150 = vmatprep.mubr.msk.f32.mxu0 %vm512_vm2, %v2870_v14  ;;  %2511 = vtanh.f32 %v487_v13 }
 0x20b   :  { %2151 = vmatmul.mubr.msk.f32.gmra.mrb[14].mxu0 %vm512_vm2, %v2872_v22  ;;  %2513 = vtanh.f32 %v488_v39  ;;  %2408 = vmatprep.subr.bf16.mxu0 %v2407_v55 }
 0x20c   :  { %2410 = vmatpush3.bf16.msra.mxu0 %v2407_v55 }
 0x20e   :  { %v2878_v27 = vpop.eup %2499 }
 0x20f   :  { %v2880_v43 = vpop.eup %2501  ;;  %2153 = vmatprep.mubr.msk.f32.mxu0 %vm512_vm2, %v2878_v27 }
 0x210   :  { %v2884_v16 = vpop.eup %2503  ;;  %2154 = vmatmul.mubr.msk.f32.gmra.mrb[16].mxu0 %vm512_vm2, %v2880_v43 }
 0x211   :  { %2156 = vmatprep.mubr.msk.f32.mxu0 %vm512_vm2, %v2884_v16  ;;  %v2890_v17 = vpop.eup %2505 }
 0x212   :  { %v2892_v18 = vpop.eup %2507 }
 0x213   :  { %v2898_v19 = vpop.eup %2509 }
 0x214   :  { %2157 = vmatmul.mubr.msk.f32.gmra.mrb[18].mxu0 %vm512_vm2, %v2890_v17  ;;  %v2900_v20 = vpop.eup %2511 }
 0x215   :  { %2159 = vmatprep.mubr.msk.f32.mxu0 %vm512_vm2, %v2892_v18  ;;  %v2906_v23 = vpop.eup %2513 }
 0x218   :  { %2160 = vmatmul.mubr.msk.f32.gmra.mrb[20].mxu0 %vm512_vm2, %v2898_v19 }
 0x219   :  { %2162 = vmatprep.mubr.msk.f32.mxu0 %vm512_vm2, %v2900_v20 }
 0x21c   :  { %2163 = vmatmul.mubr.msk.f32.gmra.mrb[22].mxu0 %vm512_vm2, %v2906_v23 }
 0x2da   :  { %v2149_v25 = vpop.f32.mrb[12].mxu0 }
 0x2db   :  { %v615_v28 = vpop.f32.mrb[13].mxu0 }
 0x2dc   :  { %v2379_v29 = vpack.c.bf16 %v2149_v25, %v615_v28 }
 0x2de   :  { %v2152_v30 = vpop.f32.mrb[14].mxu0  ;;  %2380 = vmatprep.subr.bf16.mxu1 %v2379_v29 }
 0x2df   :  { %v625_v31 = vpop.f32.mrb[15].mxu0  ;;  %2382 = vmatpush3.bf16.msra.mxu1 %v2379_v29 }
 0x2e0   :  { %v2383_v32 = vpack.c.bf16 %v2152_v30, %v625_v31 }
 0x2e2   :  { %2384 = vmatprep.subr.bf16.mxu1 %v2383_v32 }
 0x2e3   :  { %v2155_v33 = vpop.f32.mrb[16].mxu0  ;;  %2386 = vmatpush3.bf16.msra.mxu1 %v2383_v32 }
 0x2e4   :  { %v635_v34 = vpop.f32.mrb[17].mxu0 }
 0x2e5   :  { %v2387_v4 = vpack.c.bf16 %v2155_v33, %v635_v34 }
 0x2e7   :  { %v2158_v35 = vpop.f32.mrb[18].mxu0  ;;  %2388 = vmatprep.subr.bf16.mxu1 %v2387_v4 }
 0x2e8   :  { %v645_v59 = vpop.f32.mrb[19].mxu0  ;;  %2390 = vmatpush3.bf16.msra.mxu1 %v2387_v4 }
 0x2e9   :  { %v2391_v36 = vpack.c.bf16 %v2158_v35, %v645_v59 }
 0x2eb   :  { %v2161_v60 = vpop.f32.mrb[20].mxu0  ;;  %2392 = vmatprep.subr.bf16.mxu1 %v2391_v36 }
 0x2ec   :  { %v655_v37 = vpop.f32.mrb[21].mxu0  ;;  %2394 = vmatpush3.bf16.msra.mxu1 %v2391_v36 }
 0x2ed   :  { %v2395_v38 = vpack.c.bf16 %v2161_v60, %v655_v37 }
 0x2ef   :  { %v2164_v40 = vpop.f32.mrb[22].mxu0  ;;  %2396 = vmatprep.subr.bf16.mxu1 %v2395_v38 }
 0x2f0   :  { %v665_v41 = vpop.f32.mrb[23].mxu0  ;;  %2398 = vmatpush3.bf16.msra.mxu1 %v2395_v38 }
 0x2f1   :  { %v2399_v42 = vpack.c.bf16 %v2164_v40, %v665_v41 }
 0x2f3   :  { %2400 = vmatprep.subr.bf16.mxu1 %v2399_v42 }
 0x2f4   :  { %2402 = vmatpush3.bf16.msra.mxu1 %v2399_v42 }
 0x2f7   :  { %2190 = vmatmul.mubr.msk.f32.vlgmr.msra.gmra.mrb[12].mxu1 %vm207_vm1, %v500_v62 }
 0x2f8   :  { %2192 = vmatprep.mubr.msk.f32.mxu1 %vm207_vm1, %v501_v63 }
 0x2fb   :  { %2193 = vmatmul.mubr.msk.f32.gmra.mrb[14].mxu1 %vm207_vm1, %v502_v8 }
 0x2fc   :  { %2195 = vmatprep.mubr.msk.f32.mxu1 %vm207_vm1, %v503_v44 }
 0x2ff   :  { %2196 = vmatmul.mubr.msk.f32.gmra.mrb[16].mxu1 %vm207_vm1, %v504_v45 }
 0x300   :  { %2198 = vmatprep.mubr.msk.f32.mxu1 %vm207_vm1, %v505_v46 }
 0x303   :  { %2199 = vmatmul.mubr.msk.f32.gmra.mrb[18].mxu1 %vm207_vm1, %v506_v47 }
 0x304   :  { %2201 = vmatprep.mubr.msk.f32.mxu1 %vm207_vm1, %v507_v21 }
 0x307   :  { %2202 = vmatmul.mubr.msk.f32.gmra.mrb[20].mxu1 %vm207_vm1, %v508_v3 }
 0x308   :  { %2204 = vmatprep.mubr.msk.f32.mxu1 %vm207_vm1, %v509_v48 }
 0x30b   :  { %2205 = vmatmul.mubr.msk.f32.gmra.mrb[22].mxu1 %vm207_vm1, %v510_v49 }
 0x3ca   :  { %v2191_v56 = vpop.f32.mrb[12].mxu1 }
 0x3cb   :  { %v780_v5 = vpop.f32.mrb[13].mxu1  ;;  %v2973_v0 = vadd.f32 %v2191_v56, %v1854_v58 }
 0x3cc   :  { %v2977_v6 = vadd.f32 %v1854_v58, %v780_v5 }
 0x3ce   :  { %v2194_v57 = vpop.f32.mrb[14].mxu1 }
 0x3cf   :  { %v790_v26 = vpop.f32.mrb[15].mxu1  ;;  %v2985_v24 = vadd.f32 %v2194_v57, %v1854_v58 }
 0x3d0   :  { %v2991_v30 = vadd.f32 %v1854_v58, %v790_v26 }
 0x3d2   :  { %v2197_v7 = vpop.f32.mrb[16].mxu1 }
 0x3d3   :  { %v800_v9 = vpop.f32.mrb[17].mxu1  ;;  %v2997_v33 = vadd.f32 %v2197_v7, %v1854_v58 }
 0x3d4   :  { %v3005_v59 = vadd.f32 %v1854_v58, %v800_v9 }
 0x3d6   :  { %v2200_v61 = vpop.f32.mrb[18].mxu1 }
 0x3d7   :  { %v2975_v1 = vadd.f32 %v2200_v61, %v1854_v58  ;;  %v810_v2 = vpop.f32.mrb[19].mxu1 }
 0x3d8   :  { %v2979_v11 = vadd.f32 %v1854_v58, %v810_v2 }
 0x3d9   :  { %v852_v39 = vadd.f32 %v2975_v1, %v2973_v0 }
 0x3da   :  { %v851_v12 = vadd.f32 %v2979_v11, %v2977_v6  ;;  %v2203_v13 = vpop.f32.mrb[20].mxu1 }
 0x3db   :  { %v2987_v25 = vmul.f32 0.5, %v852_v39  ;;  %v2989_v28 = vadd.f32 %v2203_v13, %v1854_v58  ;;  %v820_v29 = vpop.f32.mrb[21].mxu1 }
 0x3dc   :  { %v2993_v31 = vmul.f32 0.5, %v851_v12  ;;  %v2995_v32 = vadd.f32 %v1854_v58, %v820_v29 }
 0x3dd   :  { %v864_v34 = vsub.f32 %v2973_v0, %v2987_v25  ;;  %v876_v4 = vsub.f32 %v2975_v1, %v2987_v25  ;;  %v854_v35 = vadd.f32 %v2989_v28, %v2985_v24 }
 0x3de   :  { %v863_v36 = vsub.f32 %v2977_v6, %v2993_v31  ;;  %v875_v60 = vsub.f32 %v2979_v11, %v2993_v31  ;;  %v853_v37 = vadd.f32 %v2995_v32, %v2991_v30  ;;  %v2206_v38 = vpop.f32.mrb[22].mxu1 }
 0x3df   :  { %v870_v40 = vmul.f32 %v864_v34, %v864_v34  ;;  %v882_v41 = vmul.f32 %v876_v4, %v876_v4  ;;  %v3013_v42 = vmul.f32 0.5, %v854_v35  ;;  %v3015_v62 = vadd.f32 %v2206_v38, %v1854_v58  ;;  %v830_v63 = vpop.f32.mrb[23].mxu1 }
 0x3e0   :  { %v869_v8 = vmul.f32 %v863_v36, %v863_v36  ;;  %v881_v44 = vmul.f32 %v875_v60, %v875_v60  ;;  %v3017_v45 = vmul.f32 0.5, %v853_v37  ;;  %v3019_v46 = vadd.f32 %v1854_v58, %v830_v63 }
 0x3e1   :  { %v888_v47 = vadd.f32 %v882_v41, %v870_v40  ;;  %v866_v21 = vsub.f32 %v2985_v24, %v3013_v42  ;;  %v878_v3 = vsub.f32 %v2989_v28, %v3013_v42  ;;  %v856_v48 = vadd.f32 %v3015_v62, %v2997_v33 }
 0x3e2   :  { %v887_v49 = vadd.f32 %v881_v44, %v869_v8  ;;  %v865_v50 = vsub.f32 %v2991_v30, %v3017_v45  ;;  %v877_v51 = vsub.f32 %v2995_v32, %v3017_v45  ;;  %v855_v52 = vadd.f32 %v3019_v46, %v3005_v59 }
 0x3e3   :  { %v894_v53 = vmul.f32 0.5, %v888_v47  ;;  %v872_v54 = vmul.f32 %v866_v21, %v866_v21  ;;  %v884_v55 = vmul.f32 %v878_v3, %v878_v3  ;;  %v3033_v56 = vmul.f32 0.5, %v856_v48  ;;  %v840_v3 = vld [vmem:[%s3461_s2 + $0x78] sm:$0xff]  ;;  %v839_v48 = vld [vmem:[%s3461_s2 + $0x70] sm:$0xff] }
 0x3e4   :  { %v893_v5 = vmul.f32 0.5, %v887_v49  ;;  %v871_v57 = vmul.f32 %v865_v50, %v865_v50  ;;  %v883_v26 = vmul.f32 %v877_v51, %v877_v51  ;;  %v3035_v7 = vmul.f32 0.5, %v855_v52  ;;  %v846_v52 = vld [vmem:[%s3461_s2 + $0xa8] sm:$0xff] }
 0x3e5   :  { %v900_v9 = vadd.f32 1e-05, %v894_v53  ;;  %v890_v58 = vadd.f32 %v884_v55, %v872_v54  ;;  %v868_v61 = vsub.f32 %v2997_v33, %v3033_v56  ;;  %v880_v2 = vsub.f32 %v3015_v62, %v3033_v56  ;;  %v842_v54 = vld [vmem:[%s3461_s2 + $0x88] sm:$0xff] }
 0x3e6   :  { %v899_v39 = vadd.f32 1e-05, %v893_v5  ;;  %v889_v12 = vadd.f32 %v883_v26, %v871_v57  ;;  %v867_v13 = vsub.f32 %v3005_v59, %v3035_v7  ;;  %v879_v29 = vsub.f32 %v3019_v46, %v3035_v7  ;;  %v845_v26 = vld [vmem:[%s3461_s2 + $0xa0] sm:$0xff] }
 0x3e7   :  { %2515 = vrsqrt.f32 %v900_v9  ;;  %v896_v34 = vmul.f32 0.5, %v890_v58  ;;  %v874_v4 = vmul.f32 %v868_v61, %v868_v61  ;;  %v886_v35 = vmul.f32 %v880_v2, %v880_v2  ;;  %v841_v9 = vld [vmem:[%s3461_s2 + $0x80] sm:$0xff] }
 0x3e8   :  { %2517 = vrsqrt.f32 %v899_v39  ;;  %v895_v36 = vmul.f32 0.5, %v889_v12  ;;  %v873_v60 = vmul.f32 %v867_v13, %v867_v13  ;;  %v885_v37 = vmul.f32 %v879_v29, %v879_v29 }
 0x3e9   :  { %v902_v38 = vadd.f32 1e-05, %v896_v34  ;;  %v892_v40 = vadd.f32 %v886_v35, %v874_v4 }
 0x3ea   :  { %v901_v41 = vadd.f32 1e-05, %v895_v36  ;;  %v891_v63 = vadd.f32 %v885_v37, %v873_v60 }
 0x3eb   :  { %2519 = vrsqrt.f32 %v902_v38  ;;  %v898_v8 = vmul.f32 0.5, %v892_v40 }
 0x3ec   :  { %2521 = vrsqrt.f32 %v901_v41  ;;  %v897_v44 = vmul.f32 0.5, %v891_v63 }
 0x3ed   :  { %v904_v47 = vadd.f32 1e-05, %v898_v8 }
 0x3ee   :  { %v903_v21 = vadd.f32 1e-05, %v897_v44 }
 0x3ef   :  { %2523 = vrsqrt.f32 %v904_v47 }
 0x3f0   :  { %2525 = vrsqrt.f32 %v903_v21 }
 0x3f1   :  { %v2516_v49 = vpop.eup %2515 }
 0x3f2   :  { %v2518_v50 = vpop.eup %2517  ;;  %v912_v51 = vmul.f32 %v2516_v49, %v840_v3  ;;  %v850_v49 = vld [vmem:[%s3461_s2 + $0xc8] sm:$0xff] }
 0x3f3   :  { %v911_v53 = vmul.f32 %v2518_v50, %v839_v48 }
 0x3f4   :  { %v918_v55 = vmul.f32 %v912_v51, %v2987_v25  ;;  %v930_v5 = vmul.f32 %v912_v51, %v2973_v0  ;;  %v948_v57 = vmul.f32 %v912_v51, %v2975_v1  ;;  %v848_v1 = vld [vmem:[%s3461_s2 + $0xb8] sm:$0xff] }
 0x3f5   :  { %v2520_v58 = vpop.eup %2519  ;;  %v917_v61 = vmul.f32 %v911_v53, %v2993_v31  ;;  %v929_v2 = vmul.f32 %v911_v53, %v2977_v6  ;;  %v947_v39 = vmul.f32 %v911_v53, %v2979_v11  ;;  %v847_v6 = vld [vmem:[%s3461_s2 + $0xb0] sm:$0xff]  ;;  %v844_v11 = vld [vmem:[%s3461_s2 + $0x98] sm:$0xff] }
 0x3f6   :  { %v2522_v25 = vpop.eup %2521  ;;  %v924_v12 = vsub.f32 %v846_v52, %v918_v55  ;;  %v914_v0 = vmul.f32 %v2520_v58, %v842_v54  ;;  %v843_v31 = vld [vmem:[%s3461_s2 + $0x90] sm:$0xff] }
 0x3f7   :  { %v923_v13 = vsub.f32 %v845_v26, %v917_v61  ;;  %v913_v29 = vmul.f32 %v2522_v25, %v841_v9 }
 0x3f8   :  { %v936_v34 = vadd.f32 %v930_v5, %v924_v12  ;;  %v954_v4 = vadd.f32 %v948_v57, %v924_v12  ;;  %v920_v35 = vmul.f32 %v914_v0, %v3013_v42  ;;  %v932_v36 = vmul.f32 %v914_v0, %v2985_v24 }
 0x3f9   :  { %v2524_v60 = vpop.eup %2523  ;;  %v935_v37 = vadd.f32 %v929_v2, %v923_v13  ;;  %v953_v38 = vadd.f32 %v947_v39, %v923_v13  ;;  %v950_v40 = vmul.f32 %v914_v0, %v2989_v28  ;;  %v919_v42 = vmul.f32 %v913_v29, %v3017_v45  ;;  %v969_v13 = vld [vmem:[%s3459_s1 + $0x110] sm:$0xff] }
 0x3fa   :  { %v2526_v24 = vpop.eup %2525  ;;  %v926_v41 = vsub.f32 %v848_v1, %v920_v35  ;;  %v931_v63 = vmul.f32 %v913_v29, %v2991_v30  ;;  %v949_v8 = vmul.f32 %v913_v29, %v2995_v32  ;;  %v916_v47 = vmul.f32 %v2524_v60, %v844_v11  ;;  %v849_v30 = vld [vmem:[%s3461_s2 + $0xc0] sm:$0xff]  ;;  %2257 = vmatprep.mubr.msk.f32.mxu1 %vm207_vm1, %v969_v13 }
 0x3fb   :  { %v925_v44 = vsub.f32 %v847_v6, %v919_v42  ;;  %v915_v21 = vmul.f32 %v2526_v24, %v843_v31  ;;  %2527 = vtanh.f32 %v935_v37 }
 0x3fc   :  { %v938_v3 = vadd.f32 %v932_v36, %v926_v41  ;;  %v956_v48 = vadd.f32 %v950_v40, %v926_v41  ;;  %2529 = vtanh.f32 %v936_v34  ;;  %v922_v45 = vmul.f32 %v916_v47, %v3033_v56 }
 0x3fd   :  { %v937_v28 = vadd.f32 %v931_v63, %v925_v44  ;;  %v955_v50 = vadd.f32 %v949_v8, %v925_v44  ;;  %v934_v32 = vmul.f32 %v916_v47, %v2997_v33  ;;  %v952_v51 = vmul.f32 %v916_v47, %v3015_v62  ;;  %v970_v44 = vld [vmem:[%s3459_s1 + $0x118] sm:$0xff]  ;;  %v971_v47 = vld [vmem:[%s3459_s1 + $0x120] sm:$0xff] }
 0x3fe   :  { %v921_v52 = vmul.f32 %v915_v21, %v3035_v7  ;;  %v928_v53 = vsub.f32 %v850_v49, %v922_v45  ;;  %v933_v54 = vmul.f32 %v915_v21, %v3005_v59  ;;  %v951_v55 = vmul.f32 %v915_v21, %v3019_v46  ;;  %v972_v21 = vld [vmem:[%s3459_s1 + $0x128] sm:$0xff]  ;;  %v975_v49 = vld [vmem:[%s3459_s1 + $0x140] sm:$0xff]  ;;  %v978_v45 = vld [vmem:[%s3459_s1 + $0x158] sm:$0xff] }
 0x3ff   :  { %2531 = vtanh.f32 %v937_v28  ;;  %v976_v28 = vld [vmem:[%s3459_s1 + $0x148] sm:$0xff] }
 0x400   :  { %v927_v5 = vsub.f32 %v849_v30, %v921_v52  ;;  %2533 = vtanh.f32 %v938_v3  ;;  %v940_v57 = vadd.f32 %v934_v32, %v928_v53  ;;  %v958_v56 = vadd.f32 %v952_v51, %v928_v53  ;;  %v973_v3 = vld [vmem:[%s3459_s1 + $0x130] sm:$0xff]  ;;  %v979_v30 = vld [vmem:[%s3459_s1 + $0x160] sm:$0xff]  ;;  %v980_v32 = vld [vmem:[%s3459_s1 + $0x168] sm:$0xff] }
 0x401   :  { %v1446_v51 = vld [vmem:[%s3459_s1 + $0x170] sm:$0xff]  ;;  %v1447_v52 = vld [vmem:[%s3459_s1 + $0x178] sm:$0xff] }
 0x402   :  { %v939_v26 = vadd.f32 %v933_v54, %v927_v5  ;;  %v957_v9 = vadd.f32 %v951_v55, %v927_v5  ;;  %v2435_v53 = vpack.c.bf16 %v1447_v52, %v1446_v51  ;;  %v1448_v54 = vld [vmem:[%s3459_s1 + $0x180] sm:$0xff]  ;;  %v1449_v55 = vld [vmem:[%s3459_s1 + $0x188] sm:$0xff] }
 0x403   :  { %v2439_v5 = vpack.c.bf16 %v1449_v55, %v1448_v54 }
 0x404   :  { %2535 = vtanh.f32 %v939_v26  ;;  %2436 = vmatprep.subr.bf16.mxu0 %v2435_v53 }
 0x405   :  { %v2528_v58 = vpop.eup %2527  ;;  %2537 = vtanh.f32 %v940_v57 }
 0x406   :  { %v2530_v33 = vpop.eup %2529  ;;  %2539 = vtanh.f32 %v953_v38  ;;  %2215 = vmatprep.mubr.msk.f32.mxu0 %vm512_vm2, %v2528_v58 }
 0x407   :  { %2216 = vmatmul.mubr.msk.f32.vlgmr.msra.gmra.mrb[24].mxu0 %vm512_vm2, %v2530_v33  ;;  %2541 = vtanh.f32 %v954_v4 }
 0x408   :  { %2543 = vtanh.f32 %v955_v50  ;;  %v977_v50 = vld [vmem:[%s3459_s1 + $0x150] sm:$0xff]  ;;  %2438 = vmatpush3.bf16.msra.mxu0 %v2435_v53 }
 0x409   :  { %v2532_v62 = vpop.eup %2531  ;;  %2545 = vtanh.f32 %v956_v48  ;;  %v974_v48 = vld [vmem:[%s3459_s1 + $0x138] sm:$0xff]  ;;  %2440 = vmatprep.subr.bf16.mxu0 %v2439_v5 }
 0x40a   :  { %v2534_v59 = vpop.eup %2533  ;;  %2218 = vmatprep.mubr.msk.f32.mxu0 %vm512_vm2, %v2532_v62  ;;  %2547 = vtanh.f32 %v957_v9  ;;  %v1879_v62 = vld [vmem:[%s3461_s2 + $0xd0] ss:$0 sm:$0xff] }
 0x40b   :  { %2219 = vmatmul.mubr.msk.f32.gmra.mrb[26].mxu0 %vm512_vm2, %v2534_v59  ;;  %2549 = vtanh.f32 %v958_v56 }
 0x40c   :  { %2442 = vmatpush3.bf16.msra.mxu0 %v2439_v5 }
 0x40e   :  { %v2536_v46 = vpop.eup %2535 }
 0x40f   :  { %v2538_v7 = vpop.eup %2537  ;;  %2221 = vmatprep.mubr.msk.f32.mxu0 %vm512_vm2, %v2536_v46 }
 0x410   :  { %v2540_v61 = vpop.eup %2539  ;;  %2222 = vmatmul.mubr.msk.f32.gmra.mrb[28].mxu0 %vm512_vm2, %v2538_v7 }
 0x411   :  { %2224 = vmatprep.mubr.msk.f32.mxu0 %vm512_vm2, %v2540_v61  ;;  %v2542_v2 = vpop.eup %2541 }
 0x412   :  { %v2544_v39 = vpop.eup %2543 }
 0x413   :  { %v2546_v25 = vpop.eup %2545 }
 0x414   :  { %2225 = vmatmul.mubr.msk.f32.gmra.mrb[30].mxu0 %vm512_vm2, %v2542_v2  ;;  %v2548_v12 = vpop.eup %2547 }
 0x415   :  { %2227 = vmatprep.mubr.msk.f32.mxu0 %vm512_vm2, %v2544_v39  ;;  %v2550_v0 = vpop.eup %2549 }
 0x418   :  { %2228 = vmatmul.mubr.msk.f32.gmra.mrb[32].mxu0 %vm512_vm2, %v2546_v25 }
 0x419   :  { %2230 = vmatprep.mubr.msk.f32.mxu0 %vm512_vm2, %v2548_v12 }
 0x41c   :  { %2231 = vmatmul.mubr.msk.f32.gmra.mrb[34].mxu0 %vm512_vm2, %v2550_v0 }
 0x4da   :  { %v2217_v1 = vpop.f32.mrb[24].mxu0 }
 0x4db   :  { %v1084_v29 = vpop.f32.mrb[25].mxu0 }
 0x4dc   :  { %v2411_v34 = vpack.c.bf16 %v2217_v1, %v1084_v29 }
 0x4de   :  { %v2220_v4 = vpop.f32.mrb[26].mxu0  ;;  %2412 = vmatprep.subr.bf16.mxu1 %v2411_v34 }
 0x4df   :  { %v1094_v35 = vpop.f32.mrb[27].mxu0  ;;  %2414 = vmatpush3.bf16.msra.mxu1 %v2411_v34 }
 0x4e0   :  { %v2415_v36 = vpack.c.bf16 %v2220_v4, %v1094_v35 }
 0x4e2   :  { %2416 = vmatprep.subr.bf16.mxu1 %v2415_v36 }
 0x4e3   :  { %v2223_v6 = vpop.f32.mrb[28].mxu0  ;;  %2418 = vmatpush3.bf16.msra.mxu1 %v2415_v36 }
 0x4e4   :  { %v1104_v11 = vpop.f32.mrb[29].mxu0 }
 0x4e5   :  { %v2419_v31 = vpack.c.bf16 %v2223_v6, %v1104_v11 }
 0x4e7   :  { %v2226_v60 = vpop.f32.mrb[30].mxu0  ;;  %2420 = vmatprep.subr.bf16.mxu1 %v2419_v31 }
 0x4e8   :  { %v1114_v37 = vpop.f32.mrb[31].mxu0  ;;  %2422 = vmatpush3.bf16.msra.mxu1 %v2419_v31 }
 0x4e9   :  { %v2423_v38 = vpack.c.bf16 %v2226_v60, %v1114_v37 }
 0x4eb   :  { %v2229_v40 = vpop.f32.mrb[32].mxu0  ;;  %2424 = vmatprep.subr.bf16.mxu1 %v2423_v38 }
 0x4ec   :  { %v1124_v42 = vpop.f32.mrb[33].mxu0  ;;  %2426 = vmatpush3.bf16.msra.mxu1 %v2423_v38 }
 0x4ed   :  { %v2427_v24 = vpack.c.bf16 %v2229_v40, %v1124_v42 }
 0x4ef   :  { %v2232_v41 = vpop.f32.mrb[34].mxu0  ;;  %2428 = vmatprep.subr.bf16.mxu1 %v2427_v24 }
 0x4f0   :  { %v1134_v63 = vpop.f32.mrb[35].mxu0  ;;  %2430 = vmatpush3.bf16.msra.mxu1 %v2427_v24 }
 0x4f1   :  { %v2431_v8 = vpack.c.bf16 %v2232_v41, %v1134_v63 }
 0x4f3   :  { %2432 = vmatprep.subr.bf16.mxu1 %v2431_v8 }
 0x4f4   :  { %2434 = vmatpush3.bf16.msra.mxu1 %v2431_v8 }
 0x4f7   :  { %2258 = vmatmul.mubr.msk.f32.vlgmr.msra.gmra.mrb[24].mxu1 %vm207_vm1, %v970_v44 }
 0x4f8   :  { %2260 = vmatprep.mubr.msk.f32.mxu1 %vm207_vm1, %v971_v47 }
 0x4fb   :  { %2261 = vmatmul.mubr.msk.f32.gmra.mrb[26].mxu1 %vm207_vm1, %v972_v21 }
 0x4fc   :  { %2263 = vmatprep.mubr.msk.f32.mxu1 %vm207_vm1, %v973_v3 }
 0x4ff   :  { %2264 = vmatmul.mubr.msk.f32.gmra.mrb[28].mxu1 %vm207_vm1, %v974_v48 }
 0x500   :  { %2266 = vmatprep.mubr.msk.f32.mxu1 %vm207_vm1, %v975_v49 }
 0x503   :  { %2267 = vmatmul.mubr.msk.f32.gmra.mrb[30].mxu1 %vm207_vm1, %v976_v28 }
 0x504   :  { %2269 = vmatprep.mubr.msk.f32.mxu1 %vm207_vm1, %v977_v50 }
 0x507   :  { %2270 = vmatmul.mubr.msk.f32.gmra.mrb[32].mxu1 %vm207_vm1, %v978_v45 }
 0x508   :  { %2272 = vmatprep.mubr.msk.f32.mxu1 %vm207_vm1, %v979_v30 }
 0x50b   :  { %2273 = vmatmul.mubr.msk.f32.gmra.mrb[34].mxu1 %vm207_vm1, %v980_v32 }
 0x5ca   :  { %v2259_v57 = vpop.f32.mrb[24].mxu1 }
 0x5cb   :  { %v1249_v56 = vpop.f32.mrb[25].mxu1  ;;  %v3174_v46 = vadd.f32 %v2259_v57, %v1879_v62 }
 0x5cc   :  { %v3178_v2 = vadd.f32 %v1879_v62, %v1249_v56 }
 0x5ce   :  { %v2262_v26 = vpop.f32.mrb[26].mxu1 }
 0x5cf   :  { %v1259_v9 = vpop.f32.mrb[27].mxu1  ;;  %v3186_v13 = vadd.f32 %v2262_v26, %v1879_v62 }
 0x5d0   :  { %v3192_v4 = vadd.f32 %v1879_v62, %v1259_v9 }
 0x5d2   :  { %v2265_v58 = vpop.f32.mrb[28].mxu1 }
 0x5d3   :  { %v1269_v33 = vpop.f32.mrb[29].mxu1  ;;  %v3198_v6 = vadd.f32 %v2265_v58, %v1879_v62 }
 0x5d4   :  { %v3206_v37 = vadd.f32 %v1879_v62, %v1269_v33 }
 0x5d6   :  { %v2268_v59 = vpop.f32.mrb[30].mxu1 }
 0x5d7   :  { %v3176_v7 = vadd.f32 %v2268_v59, %v1879_v62  ;;  %v1279_v61 = vpop.f32.mrb[31].mxu1 }
 0x5d8   :  { %v3180_v39 = vadd.f32 %v1879_v62, %v1279_v61 }
 0x5d9   :  { %v1321_v25 = vadd.f32 %v3176_v7, %v3174_v46 }
 0x5da   :  { %v1320_v12 = vadd.f32 %v3180_v39, %v3178_v2  ;;  %v2271_v0 = vpop.f32.mrb[32].mxu1 }
 0x5db   :  { %v3188_v1 = vmul.f32 0.5, %v1321_v25  ;;  %v3190_v29 = vadd.f32 %v2271_v0, %v1879_v62  ;;  %v1289_v34 = vpop.f32.mrb[33].mxu1 }
 0x5dc   :  { %v3194_v35 = vmul.f32 0.5, %v1320_v12  ;;  %v3196_v36 = vadd.f32 %v1879_v62, %v1289_v34 }
 0x5dd   :  { %v1333_v11 = vsub.f32 %v3174_v46, %v3188_v1  ;;  %v1345_v31 = vsub.f32 %v3176_v7, %v3188_v1  ;;  %v1323_v60 = vadd.f32 %v3190_v29, %v3186_v13 }
 0x5de   :  { %v1332_v38 = vsub.f32 %v3178_v2, %v3194_v35  ;;  %v1344_v40 = vsub.f32 %v3180_v39, %v3194_v35  ;;  %v1322_v42 = vadd.f32 %v3196_v36, %v3192_v4  ;;  %v2274_v24 = vpop.f32.mrb[34].mxu1 }
 0x5df   :  { %v1339_v41 = vmul.f32 %v1333_v11, %v1333_v11  ;;  %v1351_v63 = vmul.f32 %v1345_v31, %v1345_v31  ;;  %v3214_v8 = vmul.f32 0.5, %v1323_v60  ;;  %v3216_v44 = vadd.f32 %v2274_v24, %v1879_v62  ;;  %v1299_v47 = vpop.f32.mrb[35].mxu1 }
 0x5e0   :  { %v1338_v21 = vmul.f32 %v1332_v38, %v1332_v38  ;;  %v1350_v3 = vmul.f32 %v1344_v40, %v1344_v40  ;;  %v3218_v48 = vmul.f32 0.5, %v1322_v42  ;;  %v3220_v49 = vadd.f32 %v1879_v62, %v1299_v47 }
 0x5e1   :  { %v1357_v28 = vadd.f32 %v1351_v63, %v1339_v41  ;;  %v1335_v50 = vsub.f32 %v3186_v13, %v3214_v8  ;;  %v1347_v45 = vsub.f32 %v3190_v29, %v3214_v8  ;;  %v1325_v30 = vadd.f32 %v3216_v44, %v3198_v6 }
 0x5e2   :  { %v1356_v32 = vadd.f32 %v1350_v3, %v1338_v21  ;;  %v1334_v51 = vsub.f32 %v3192_v4, %v3218_v48  ;;  %v1346_v52 = vsub.f32 %v3196_v36, %v3218_v48  ;;  %v1324_v53 = vadd.f32 %v3220_v49, %v3206_v37 }
 0x5e3   :  { %v1363_v54 = vmul.f32 0.5, %v1357_v28  ;;  %v1341_v55 = vmul.f32 %v1335_v50, %v1335_v50  ;;  %v1353_v5 = vmul.f32 %v1347_v45, %v1347_v45  ;;  %v3234_v57 = vmul.f32 0.5, %v1325_v30  ;;  %v1309_v45 = vld [vmem:[%s3461_s2 + $0xe0] sm:$0xff]  ;;  %v1308_v30 = vld [vmem:[%s3461_s2 + $0xd8] sm:$0xff] }
 0x5e4   :  { %v1362_v56 = vmul.f32 0.5, %v1356_v32  ;;  %v1340_v26 = vmul.f32 %v1334_v51, %v1334_v51  ;;  %v1352_v9 = vmul.f32 %v1346_v52, %v1346_v52  ;;  %v3236_v58 = vmul.f32 0.5, %v1324_v53  ;;  %v1315_v53 = vld [vmem:[%s3461_s2 + $0x110] sm:$0xff] }
 0x5e5   :  { %v1369_v33 = vadd.f32 1e-05, %v1363_v54  ;;  %v1359_v62 = vadd.f32 %v1353_v5, %v1341_v55  ;;  %v1337_v59 = vsub.f32 %v3198_v6, %v3234_v57  ;;  %v1349_v61 = vsub.f32 %v3216_v44, %v3234_v57  ;;  %v1311_v55 = vld [vmem:[%s3461_s2 + $0xf0] sm:$0xff] }
 0x5e6   :  { %v1368_v25 = vadd.f32 1e-05, %v1362_v56  ;;  %v1358_v12 = vadd.f32 %v1352_v9, %v1340_v26  ;;  %v1336_v0 = vsub.f32 %v3206_v37, %v3236_v58  ;;  %v1348_v34 = vsub.f32 %v3220_v49, %v3236_v58  ;;  %v1314_v9 = vld [vmem:[%s3461_s2 + $0x108] sm:$0xff] }
 0x5e7   :  { %2551 = vrsqrt.f32 %v1369_v33  ;;  %v1365_v11 = vmul.f32 0.5, %v1359_v62  ;;  %v1343_v31 = vmul.f32 %v1337_v59, %v1337_v59  ;;  %v1355_v60 = vmul.f32 %v1349_v61, %v1349_v61  ;;  %v1310_v33 = vld [vmem:[%s3461_s2 + $0xe8] sm:$0xff] }
 0x5e8   :  { %2553 = vrsqrt.f32 %v1368_v25  ;;  %v1364_v38 = vmul.f32 0.5, %v1358_v12  ;;  %v1342_v40 = vmul.f32 %v1336_v0, %v1336_v0  ;;  %v1354_v42 = vmul.f32 %v1348_v34, %v1348_v34 }
 0x5e9   :  { %v1371_v24 = vadd.f32 1e-05, %v1365_v11  ;;  %v1361_v41 = vadd.f32 %v1355_v60, %v1343_v31 }
 0x5ea   :  { %v1370_v63 = vadd.f32 1e-05, %v1364_v38  ;;  %v1360_v47 = vadd.f32 %v1354_v42, %v1342_v40 }
 0x5eb   :  { %2555 = vrsqrt.f32 %v1371_v24  ;;  %v1367_v21 = vmul.f32 0.5, %v1361_v41 }
 0x5ec   :  { %2557 = vrsqrt.f32 %v1370_v63  ;;  %v1366_v3 = vmul.f32 0.5, %v1360_v47 }
 0x5ed   :  { %v1373_v28 = vadd.f32 1e-05, %v1367_v21 }
 0x5ee   :  { %v1372_v50 = vadd.f32 1e-05, %v1366_v3 }
 0x5ef   :  { %2559 = vrsqrt.f32 %v1373_v28 }
 0x5f0   :  { %2561 = vrsqrt.f32 %v1372_v50 }
 0x5f1   :  { %v2552_v32 = vpop.eup %2551 }
 0x5f2   :  { %v2554_v51 = vpop.eup %2553  ;;  %v1381_v52 = vmul.f32 %v2552_v32, %v1309_v45  ;;  %v1319_v32 = vld [vmem:[%s3461_s2 + $0x130] sm:$0xff] }
 0x5f3   :  { %v1380_v54 = vmul.f32 %v2554_v51, %v1308_v30 }
 0x5f4   :  { %v1387_v5 = vmul.f32 %v1381_v52, %v3188_v1  ;;  %v1399_v56 = vmul.f32 %v1381_v52, %v3174_v46  ;;  %v1417_v26 = vmul.f32 %v1381_v52, %v3176_v7  ;;  %v1317_v7 = vld [vmem:[%s3461_s2 + $0x120] sm:$0xff] }
 0x5f5   :  { %v2556_v62 = vpop.eup %2555  ;;  %v1386_v59 = vmul.f32 %v1380_v54, %v3194_v35  ;;  %v1398_v61 = vmul.f32 %v1380_v54, %v3178_v2  ;;  %v1416_v25 = vmul.f32 %v1380_v54, %v3180_v39  ;;  %v1316_v2 = vld [vmem:[%s3461_s2 + $0x118] sm:$0xff]  ;;  %v1313_v39 = vld [vmem:[%s3461_s2 + $0x100] sm:$0xff] }
 0x5f6   :  { %v2558_v1 = vpop.eup %2557  ;;  %v1393_v12 = vsub.f32 %v1315_v53, %v1387_v5  ;;  %v1383_v46 = vmul.f32 %v2556_v62, %v1311_v55  ;;  %v1312_v35 = vld [vmem:[%s3461_s2 + $0xf8] sm:$0xff] }
 0x5f7   :  { %v1392_v0 = vsub.f32 %v1314_v9, %v1386_v59  ;;  %v1382_v34 = vmul.f32 %v2558_v1, %v1310_v33 }
 0x5f8   :  { %v1405_v11 = vadd.f32 %v1399_v56, %v1393_v12  ;;  %v1423_v31 = vadd.f32 %v1417_v26, %v1393_v12  ;;  %v1389_v60 = vmul.f32 %v1383_v46, %v3214_v8  ;;  %v1401_v38 = vmul.f32 %v1383_v46, %v3186_v13 }
 0x5f9   :  { %v2560_v40 = vpop.eup %2559  ;;  %v1404_v42 = vadd.f32 %v1398_v61, %v1392_v0  ;;  %v1422_v24 = vadd.f32 %v1416_v25, %v1392_v0  ;;  %v1419_v41 = vmul.f32 %v1383_v46, %v3190_v29  ;;  %v1388_v8 = vmul.f32 %v1382_v34, %v3218_v48 }
 0x5fa   :  { %v2562_v13 = vpop.eup %2561  ;;  %v1395_v63 = vsub.f32 %v1317_v7, %v1389_v60  ;;  %v1400_v47 = vmul.f32 %v1382_v34, %v3192_v4  ;;  %v1418_v21 = vmul.f32 %v1382_v34, %v3196_v36  ;;  %2563 = vtanh.f32 %v1405_v11  ;;  %v1318_v4 = vld [vmem:[%s3461_s2 + $0x128] sm:$0xff] }
 0x5fb   :  { %v1394_v3 = vsub.f32 %v1316_v2, %v1388_v8  ;;  %v1385_v28 = vmul.f32 %v2560_v40, %v1313_v39  ;;  %v1384_v50 = vmul.f32 %v2562_v13, %v1312_v35  ;;  %2565 = vtanh.f32 %v1404_v42 }
 0x5fc   :  { %v1407_v45 = vadd.f32 %v1401_v38, %v1395_v63  ;;  %v1425_v30 = vadd.f32 %v1419_v41, %v1395_v63 }
 0x5fd   :  { %v1406_v29 = vadd.f32 %v1400_v47, %v1394_v3  ;;  %v1424_v51 = vadd.f32 %v1418_v21, %v1394_v3  ;;  %v1391_v48 = vmul.f32 %v1385_v28, %v3234_v57  ;;  %v1403_v36 = vmul.f32 %v1385_v28, %v3198_v6 }
 0x5fe   :  { %v1421_v52 = vmul.f32 %v1385_v28, %v3216_v44  ;;  %v1390_v53 = vmul.f32 %v1384_v50, %v3236_v58  ;;  %2567 = vtanh.f32 %v1407_v45  ;;  %v1402_v55 = vmul.f32 %v1384_v50, %v3206_v37  ;;  %v1455_v28 = vld [vmem:[%s3459_s1 + $0x1b8] sm:$0xff]  ;;  %v1456_v45 = vld [vmem:[%s3459_s1 + $0x1c0] sm:$0xff] }
 0x5ff   :  { %v1397_v54 = vsub.f32 %v1319_v32, %v1391_v48  ;;  %v1420_v5 = vmul.f32 %v1384_v50, %v3220_v49  ;;  %2569 = vtanh.f32 %v1406_v29  ;;  %v1451_v50 = vld [vmem:[%s3459_s1 + $0x198] sm:$0xff]  ;;  %v1457_v32 = vld [vmem:[%s3459_s1 + $0x1c8] sm:$0xff] }
 0x600   :  { %v1396_v56 = vsub.f32 %v1318_v4, %v1390_v53  ;;  %2571 = vtanh.f32 %v1422_v24  ;;  %v1453_v29 = vld [vmem:[%s3459_s1 + $0x1a8] sm:$0xff]  ;;  %v1459_v48 = vld [vmem:[%s3459_s1 + $0x1d8] sm:$0xff]  ;;  %v1460_v4 = vld [vmem:[%s3459_s1 + $0x1e0] sm:$0xff] }
 0x601   :  { %v1409_v26 = vadd.f32 %v1403_v36, %v1397_v54  ;;  %v1427_v57 = vadd.f32 %v1421_v52, %v1397_v54  ;;  %v1461_v36 = vld [vmem:[%s3459_s1 + $0x1e8] sm:$0xff]  ;;  %v1904_v52 = vld [vmem:[%s3461_s2 + $0x138] ss:$0 sm:$0xff] }
 0x602   :  { %v1408_v9 = vadd.f32 %v1402_v55, %v1396_v56  ;;  %v1426_v33 = vadd.f32 %v1420_v5, %v1396_v56 }
 0x603   :  { %2573 = vtanh.f32 %v1409_v26 }
 0x604   :  { %v2564_v62 = vpop.eup %2563  ;;  %2575 = vtanh.f32 %v1408_v9 }
 0x605   :  { %v2566_v6 = vpop.eup %2565  ;;  %2577 = vtanh.f32 %v1423_v31  ;;  %v1435_v58 = vadd.f32 %v2564_v62, %v2864_v10 }
 0x606   :  { %v1434_v44 = vadd.f32 %v2566_v6, %v2862_v15  ;;  %2579 = vtanh.f32 %v1424_v51  ;;  %v1458_v51 = vld [vmem:[%s3459_s1 + $0x1d0] sm:$0xff]  ;;  %v2588_v6 = vld [vmem:[%s3460_s0 + $0x8] sm:$0xff] }
 0x607   :  { %2581 = vtanh.f32 %v1425_v30  ;;  %v1452_v30 = vld [vmem:[%s3459_s1 + $0x1a0] sm:$0xff] }
 0x608   :  { %v2568_v59 = vpop.eup %2567  ;;  %2283 = vmatprep.mubr.msk.f32.mxu0 %vm512_vm2, %v1434_v44  ;;  %2583 = vtanh.f32 %v1426_v33  ;;  %v2587_v33 = vld [vmem:[%s3460_s0 + $0x28] sm:$0xff] }
 0x609   :  { %v2570_v37 = vpop.eup %2569  ;;  %2284 = vmatmul.mubr.msk.f32.vlgmr.msra.gmra.mrb[36].mxu0 %vm512_vm2, %v1435_v58  ;;  %v1437_v61 = vadd.f32 %v2568_v59, %v2872_v22  ;;  %2585 = vtanh.f32 %v1427_v57  ;;  %v2589_v58 = vld [vmem:[%s3460_s0 + $0x20] sm:$0xff] }
 0x60a   :  { %v1436_v49 = vadd.f32 %v2570_v37, %v2870_v14  ;;  %v2572_v25 = vpop.eup %2571 }
 0x60b   :  { %v1440_v14 = vadd.f32 %v2572_v25, %v2884_v16 }
 0x60c   :  { %2286 = vmatprep.mubr.msk.f32.mxu0 %vm512_vm2, %v1436_v49  ;;  %v2590_v49 = vld [vmem:[%s3460_s0] sm:$0xff] }
 0x60d   :  { %v2574_v15 = vpop.eup %2573  ;;  %2287 = vmatmul.mubr.msk.f32.gmra.mrb[38].mxu0 %vm512_vm2, %v1437_v61 }
 0x60e   :  { %v2576_v10 = vpop.eup %2575  ;;  %v1439_v12 = vadd.f32 %v2574_v15, %v2880_v43 }
 0x60f   :  { %v1438_v1 = vadd.f32 %v2576_v10, %v2878_v27  ;;  %v2578_v46 = vpop.eup %2577 }
 0x610   :  { %v2580_v0 = vpop.eup %2579  ;;  %v1441_v22 = vadd.f32 %v2578_v46, %v2890_v17  ;;  %v1454_v17 = vld [vmem:[%s3459_s1 + $0x1b0] sm:$0xff] }
 0x611   :  { %2289 = vmatprep.mubr.msk.f32.mxu0 %vm512_vm2, %v1438_v1  ;;  %v2582_v7 = vpop.eup %2581  ;;  %v1442_v34 = vadd.f32 %v2580_v0, %v2892_v18  ;;  %2331 = vmatprep.mubr.msk.f32.mxu1 %vm207_vm1, %v1454_v17  ;;  %v1450_v18 = vld [vmem:[%s3459_s1 + $0x190] sm:$0xff]  ;;  %v2591_v0 = vld [vmem:[%s3460_s0 + $0x38] sm:$0xff] }
 0x612   :  { %2290 = vmatmul.mubr.msk.f32.gmra.mrb[40].mxu0 %vm512_vm2, %v1439_v12  ;;  %v2584_v11 = vpop.eup %2583  ;;  %v1443_v27 = vadd.f32 %v2582_v7, %v2898_v19  ;;  %v2592_v7 = vld [vmem:[%s3460_s0 + $0x18] sm:$0xff] }
 0x613   :  { %2292 = vmatprep.mubr.msk.f32.mxu0 %vm512_vm2, %v1440_v14  ;;  %v2586_v43 = vpop.eup %2585  ;;  %v1444_v16 = vadd.f32 %v2584_v11, %v2900_v20  ;;  %v2593_v11 = vld [vmem:[%s3460_s0 + $0x30] sm:$0xff] }
 0x614   :  { %v1445_v31 = vadd.f32 %v2586_v43, %v2906_v23 }
 0x616   :  { %2293 = vmatmul.mubr.msk.f32.gmra.mrb[42].mxu0 %vm512_vm2, %v1441_v22 }
 0x617   :  { %2295 = vmatprep.mubr.msk.f32.mxu0 %vm512_vm2, %v1442_v34 }
 0x61a   :  { %2296 = vmatmul.mubr.msk.f32.gmra.mrb[44].mxu0 %vm512_vm2, %v1443_v27 }
 0x61b   :  { %2298 = vmatprep.mubr.msk.f32.mxu0 %vm512_vm2, %v1444_v16  ;;  %v2594_v16 = vld [vmem:[%s3460_s0 + $0x10] sm:$0xff] }
 0x61e   :  { %2299 = vmatmul.mubr.msk.f32.gmra.mrb[46].mxu0 %vm512_vm2, %v1445_v31 }
 0x61f   :  { %2325 = vmatprep.mubr.msk.f32.mxu0 %vm207_vm1, %v1450_v18 }
 0x6dc   :  { %v2285_v19 = vpop.f32.mrb[36].mxu0 }
 0x6dd   :  { %v1565_v20 = vpop.f32.mrb[37].mxu0 }
 0x6de   :  { %v2443_v60 = vpack.c.bf16 %v2285_v19, %v1565_v20  ;;  %v2595_v20 = vld [vmem:[%s3460_s0 + $0x48] sm:$0xff] }
 0x6e0   :  { %v2288_v38 = vpop.f32.mrb[38].mxu0  ;;  %2444 = vmatprep.subr.bf16.mxu0 %v2443_v60  ;;  %2467 = vmatprep.subr.bf16.mxu1 %v2443_v60 }
 0x6e1   :  { %v1575_v23 = vpop.f32.mrb[39].mxu0  ;;  %2446 = vmatpush3.bf16.msra.mxu0 %v2443_v60  ;;  %2473 = vmatpush3.bf16.msra.mxu1 %v2443_v60 }
 0x6e2   :  { %v2447_v2 = vpack.c.bf16 %v2288_v38, %v1575_v23  ;;  %v2596_v38 = vld [vmem:[%s3460_s0 + $0x40] sm:$0xff] }
 0x6e4   :  { %2448 = vmatprep.subr.bf16.mxu0 %v2447_v2  ;;  %2468 = vmatprep.subr.bf16.mxu1 %v2447_v2 }
 0x6e5   :  { %v2291_v39 = vpop.f32.mrb[40].mxu0  ;;  %2450 = vmatpush3.bf16.msra.mxu0 %v2447_v2  ;;  %2474 = vmatpush3.bf16.msra.mxu1 %v2447_v2 }
 0x6e6   :  { %v1585_v35 = vpop.f32.mrb[41].mxu0 }
 0x6e7   :  { %v2451_v40 = vpack.c.bf16 %v2291_v39, %v1585_v35 }
 0x6e9   :  { %v2294_v42 = vpop.f32.mrb[42].mxu0  ;;  %2452 = vmatprep.subr.bf16.mxu0 %v2451_v40  ;;  %2469 = vmatprep.subr.bf16.mxu1 %v2451_v40 }
 0x6ea   :  { %v1595_v24 = vpop.f32.mrb[43].mxu0  ;;  %2454 = vmatpush3.bf16.msra.mxu0 %v2451_v40  ;;  %2475 = vmatpush3.bf16.msra.mxu1 %v2451_v40 }
 0x6eb   :  { %v2455_v41 = vpack.c.bf16 %v2294_v42, %v1595_v24  ;;  %v2597_v42 = vld [vmem:[%s3460_s0 + $0x58] sm:$0xff] }
 0x6ed   :  { %v2297_v8 = vpop.f32.mrb[44].mxu0  ;;  %2456 = vmatprep.subr.bf16.mxu0 %v2455_v41  ;;  %2470 = vmatprep.subr.bf16.mxu1 %v2455_v41 }
 0x6ee   :  { %v1605_v13 = vpop.f32.mrb[45].mxu0  ;;  %2458 = vmatpush3.bf16.msra.mxu0 %v2455_v41  ;;  %2476 = vmatpush3.bf16.msra.mxu1 %v2455_v41  ;;  %v2598_v41 = vld [vmem:[%s3460_s0 + $0x50] sm:$0xff] }
 0x6ef   :  { %v2459_v63 = vpack.c.bf16 %v2297_v8, %v1605_v13 }
 0x6f1   :  { %v2300_v47 = vpop.f32.mrb[46].mxu0  ;;  %2460 = vmatprep.subr.bf16.mxu0 %v2459_v63  ;;  %2471 = vmatprep.subr.bf16.mxu1 %v2459_v63 }
 0x6f2   :  { %v1615_v21 = vpop.f32.mrb[47].mxu0  ;;  %2462 = vmatpush3.bf16.msra.mxu0 %v2459_v63  ;;  %2477 = vmatpush3.bf16.msra.mxu1 %v2459_v63 }
 0x6f3   :  { %v2463_v3 = vpack.c.bf16 %v2300_v47, %v1615_v21 }
 0x6f5   :  { %2464 = vmatprep.subr.bf16.mxu0 %v2463_v3  ;;  %2472 = vmatprep.subr.bf16.mxu1 %v2463_v3 }
 0x6f6   :  { %2466 = vmatpush3.bf16.msra.mxu0 %v2463_v3  ;;  %2478 = vmatpush3.bf16.msra.mxu1 %v2463_v3 }
 0x6f9   :  { %2332 = vmatmul.mubr.msk.f32.vlgmr.msra.gmra.mrb[36].mxu1 %vm207_vm1, %v1455_v28  ;;  %2326 = vmatmul.mubr.msk.f32.vlgmr.msra.gmra.mrb[48].mxu0 %vm207_vm1, %v1451_v50 }
 0x6fa   :  { %2334 = vmatprep.mubr.msk.f32.mxu1 %vm207_vm1, %v1456_v45  ;;  %2328 = vmatprep.mubr.msk.f32.mxu0 %vm207_vm1, %v1452_v30 }
 0x6fd   :  { %2335 = vmatmul.mubr.msk.f32.gmra.mrb[38].mxu1 %vm207_vm1, %v1457_v32  ;;  %2329 = vmatmul.mubr.msk.f32.gmra.mrb[50].mxu0 %vm207_vm1, %v1453_v29 }
 0x6fe   :  { %2337 = vmatprep.mubr.msk.f32.mxu1 %vm207_vm1, %v1458_v51 }
 0x701   :  { %2338 = vmatmul.mubr.msk.f32.gmra.mrb[40].mxu1 %vm207_vm1, %v1459_v48 }
 0x702   :  { %2340 = vmatprep.mubr.msk.f32.mxu1 %vm207_vm1, %v1460_v4 }
 0x705   :  { %2341 = vmatmul.mubr.msk.f32.gmra.mrb[42].mxu1 %vm207_vm1, %v1461_v36 }
 0x7cc   :  { %v2333_v53 = vpop.f32.mrb[36].mxu1  ;;  %v2327_v54 = vpop.f32.mrb[48].mxu0 }
 0x7cd   :  { %v1756_v55 = vadd.f32 %v2333_v53, %v1904_v52  ;;  %v1750_v5 = vpop.f32.mrb[37].mxu1  ;;  %v1736_v56 = vadd.f32 %v2327_v54, %v1904_v52  ;;  %v1730_v26 = vpop.f32.mrb[49].mxu0 }
 0x7ce   :  { %v1751_v57 = vadd.f32 %v1904_v52, %v1750_v5  ;;  %v1731_v9 = vadd.f32 %v1904_v52, %v1730_v26 }
 0x7cf   :  { %v1794_v62 = vadd.f32 %v2587_v33, %v1756_v55  ;;  %v1790_v44 = vadd.f32 %v2588_v6, %v1736_v56 }
 0x7d0   :  { %v1793_v59 = vadd.f32 %v2589_v58, %v1751_v57  ;;  %v2336_v37 = vpop.f32.mrb[38].mxu1  ;;  %v1789_v61 = vadd.f32 %v2590_v49, %v1731_v9  ;;  %v2330_v25 = vpop.f32.mrb[50].mxu0 }
 0x7d1   :  { %1806 = vst.msk [vmem:[%s3462_s3 + $0x28] sm:$0xff] %vm41_vm0, %v1794_v62  ;;  %v1766_v15 = vadd.f32 %v2336_v37, %v1904_v52  ;;  %v1760_v10 = vpop.f32.mrb[39].mxu1  ;;  %1802 = vst.msk [vmem:[%s3462_s3 + $0x8] sm:$0xff] %vm41_vm0, %v1790_v44  ;;  %v1746_v1 = vadd.f32 %v2330_v25, %v1904_v52  ;;  %v1740_v12 = vpop.f32.mrb[51].mxu0 }
 0x7d2   :  { %1805 = vst.msk [vmem:[%s3462_s3 + $0x20] sm:$0xff] %vm41_vm0, %v1793_v59  ;;  %v1761_v46 = vadd.f32 %v1904_v52, %v1760_v10  ;;  %1801 = vst.msk [vmem:[%s3462_s3] sm:$0xff] %vm41_vm0, %v1789_v61  ;;  %v1741_v14 = vadd.f32 %v1904_v52, %v1740_v12 }
 0x7d3   :  { %v1796_v22 = vadd.f32 %v2591_v0, %v1766_v15  ;;  %v1792_v34 = vadd.f32 %v2592_v7, %v1746_v1 }
 0x7d4   :  { %v1795_v27 = vadd.f32 %v2593_v11, %v1761_v46  ;;  %v2339_v43 = vpop.f32.mrb[40].mxu1  ;;  %v1791_v31 = vadd.f32 %v2594_v16, %v1741_v14 }
 0x7d5   :  { %1808 = vst.msk [vmem:[%s3462_s3 + $0x38] sm:$0xff] %vm41_vm0, %v1796_v22  ;;  %v1776_v17 = vadd.f32 %v2339_v43, %v1904_v52  ;;  %v1770_v18 = vpop.f32.mrb[41].mxu1  ;;  %1804 = vst.msk [vmem:[%s3462_s3 + $0x18] sm:$0xff] %vm41_vm0, %v1792_v34 }
 0x7d6   :  { %1807 = vst.msk [vmem:[%s3462_s3 + $0x30] sm:$0xff] %vm41_vm0, %v1795_v27  ;;  %v1771_v19 = vadd.f32 %v1904_v52, %v1770_v18  ;;  %1803 = vst.msk [vmem:[%s3462_s3 + $0x10] sm:$0xff] %vm41_vm0, %v1791_v31 }
 0x7d7   :  { %v1798_v60 = vadd.f32 %v2595_v20, %v1776_v17 }
 0x7d8   :  { %v1797_v23 = vadd.f32 %v2596_v38, %v1771_v19  ;;  %v2342_v2 = vpop.f32.mrb[42].mxu1 }
 0x7d9   :  { %1810 = vst.msk [vmem:[%s3462_s3 + $0x48] sm:$0xff] %vm41_vm0, %v1798_v60  ;;  %v1786_v39 = vadd.f32 %v2342_v2, %v1904_v52  ;;  %v1780_v35 = vpop.f32.mrb[43].mxu1 }
 0x7da   :  { %1809 = vst.msk [vmem:[%s3462_s3 + $0x40] sm:$0xff] %vm41_vm0, %v1797_v23  ;;  %v1781_v40 = vadd.f32 %v1904_v52, %v1780_v35 }
 0x7db   :  { %v1800_v24 = vadd.f32 %v2597_v42, %v1786_v39 }
 0x7dc   :  { %v1799_v8 = vadd.f32 %v2598_v41, %v1781_v40 }
 0x7dd   :  { %1812 = vst.msk [vmem:[%s3462_s3 + $0x58] sm:$0xff] %vm41_vm0, %v1800_v24 }
 0x7de   :  { %1811 = vst.msk [vmem:[%s3462_s3 + $0x50] sm:$0xff] %vm41_vm0, %v1799_v8 }

</bundles_post_ra>
